<compile_context>
chip_gen: v7x
topology: tpu7x:2x2x1
jax: 0.10.0
libtpu: 0.0.40
codegen_flags: <defaults>
</compile_context>

<pallas_src>
import jax
import jax.numpy as jnp
from jax.experimental import pallas as pl
from jax.experimental.pallas import tpu as pltpu


# ----------------------------------------------------------------------------
# Fused encoder + ordinal-head kernel.  One batch group (Bg elements) per step.
#   cw_ref   : SMEM [C]      per-channel collapse weights
#   x_ref    : [Bg, C, S, D] image block
#   pos_ref  : [S, D]        positional embedding
#   ln*_g/b  : [1, D]        layernorm affine params
#   wqkv     : [D, 3D]       fused attention input projection
#   wo       : [D, D]        attention output projection
#   w1,b1,w2,b2 : MLP (D -> F -> D)
#   whb      : [D, D]        block-diagonal head weight = kron(I_{D/S}, wh)
#   bhb      : [1, D]        tiled head bias
#   o_ref    : [Bg, S, D]    final network output block
# ----------------------------------------------------------------------------
def vit_fused_kernel(cw_ref, x_ref, pos_ref,
                     ln1_g_ref, ln1_b_ref, wqkv_ref, wo_ref,
                     ln2_g_ref, ln2_b_ref, w1_ref, b1_ref, w2_ref, b2_ref,
                     whb_ref, bhb_ref, o_ref):
    Bg, C, S, D = x_ref.shape

    # 1) collapse channels with learned per-channel weights (1x1-conv-like)
    xv = x_ref[...]                                        # [Bg, C, S, D]
    tok = cw_ref[0] * xv[:, 0]
    for c in range(1, C):
        tok = tok + cw_ref[c] * xv[:, c]                   # [Bg, S, D]

    # 2) positional embedding (broadcast over the batch block)
    tok = tok + pos_ref[...]

    # fold batch block into the matmul M dimension
    tok2 = tok.reshape(Bg * S, D)                          # [Bg*S, D]

    def layer_norm(v, g, b):
        mu = jnp.mean(v, axis=-1, keepdims=True)
        var = jnp.mean((v - mu) ** 2, axis=-1, keepdims=True)
        return (v - mu) * jax.lax.rsqrt(var + 1e-5) * g + b

    # 3) pre-LN single-head self-attention with fused QKV projection (N = 3D)
    h = layer_norm(tok2, ln1_g_ref[...], ln1_b_ref[...])
    qkv = jnp.dot(h, wqkv_ref[...], preferred_element_type=jnp.float32)    # [Bg*S, 3D]
    q = qkv[:, :D].reshape(Bg, S, D)
    k = qkv[:, D:2 * D].reshape(Bg, S, D)
    v = qkv[:, 2 * D:].reshape(Bg, S, D)
    scale = 1.0 / (D ** 0.5)
    # NOTE: contracting the last dim of both q and k implies an XLU relayout of
    # k; negligible at S=16, revisit for long sequences.
    s = jnp.einsum('bqd,bkd->bqk', q, k,
                   preferred_element_type=jnp.float32) * scale             # [Bg, S, S]
    s = s - jnp.max(s, axis=-1, keepdims=True)
    e = jnp.exp(s)
    p = e * pl.reciprocal(jnp.sum(e, axis=-1, keepdims=True), approx=True)
    attn = jnp.einsum('bqk,bkd->bqd', p, v,
                      preferred_element_type=jnp.float32)                  # [Bg, S, D]
    attn = jnp.dot(attn.reshape(Bg * S, D), wo_ref[...],
                   preferred_element_type=jnp.float32)
    tok2 = tok2 + attn

    # 4) pre-LN MLP (feed-forward)
    h2 = layer_norm(tok2, ln2_g_ref[...], ln2_b_ref[...])
    m = jnp.dot(h2, w1_ref[...], preferred_element_type=jnp.float32) + b1_ref[...]
    m = jax.nn.gelu(m)
    m = jnp.dot(m, w2_ref[...], preferred_element_type=jnp.float32) + b2_ref[...]
    tok2 = tok2 + m                                                        # [Bg*S, D]

    # 5) fused ordinal head.  torch: y = head(enc.view(B, D, S)).view(B, S, D).
    #    Because enc is row-major contiguous and D % S == 0, the
    #    view -> linear(S->S) -> view round trip is exactly
    #        out[:, c*S:(c+1)*S] = sigmoid(enc[:, c*S:(c+1)*S] @ wh + bh)
    #    i.e. one block-diagonal matmul (whb = kron(I_{D/S}, wh), bhb = tile(bh)).
    #    This keeps the head lane-dense (last dim = D = 128) with no in-kernel
    #    reshape/relayout.
    y = jnp.dot(tok2, whb_ref[...], preferred_element_type=jnp.float32) + bhb_ref[...]
    y = jax.nn.sigmoid(y)
    o_ref[...] = y.reshape(Bg, S, D)


def vit_object_detection_forward(x, p, *, batch_block=None):
    B, C, H, W = x.shape
    S, D = H, W                       # tokens are image rows
    F = p["w1"].shape[1]
    # TODO(synk): D % S != 0 would need a reshape-based head path; not needed here.
    assert D % S == 0, "fused head path requires d_model % n_tokens == 0"

    if batch_block is None:
        # Keep >= 2 parallel grid steps when possible (v7x has 2 TensorCores),
        # folding the remaining batch into the matmul M dimension per step.
        batch_block = B // 2 if (B % 2 == 0 and B >= 2) else 1
    assert B % batch_block == 0
    G = B // batch_block

    # Tiny layout prep outside the kernel: fuse QKV weights; fold the head's
    # view/linear/view into a block-diagonal [D, D] weight + tiled bias.
    wqkv = jnp.concatenate([p["wq"], p["wk"], p["wv"]], axis=1)            # [D, 3D]
    whb = jnp.kron(jnp.eye(D // S, dtype=p["wh"].dtype), p["wh"])          # [D, D]
    bhb = jnp.tile(p["bh"], (1, D // S))                                   # [1, D]

    const2 = lambda g: (0, 0)
    out = pl.pallas_call(
        vit_fused_kernel,
        out_shape=jax.ShapeDtypeStruct((B, S, D), jnp.float32),
        grid=(G,),
        in_specs=[
            pl.BlockSpec(memory_space=pltpu.MemorySpace.SMEM),              # cw
            pl.BlockSpec((batch_block, C, S, D), lambda g: (g, 0, 0, 0)),   # x
            pl.BlockSpec((S, D), const2),                                   # pos
            pl.BlockSpec((1, D), const2),                                   # ln1_g
            pl.BlockSpec((1, D), const2),                                   # ln1_b
            pl.BlockSpec((D, 3 * D), const2),                               # wqkv
            pl.BlockSpec((D, D), const2),                                   # wo
            pl.BlockSpec((1, D), const2),                                   # ln2_g
            pl.BlockSpec((1, D), const2),                                   # ln2_b
            pl.BlockSpec((D, F), const2),                                   # w1
            pl.BlockSpec((1, F), const2),                                   # b1
            pl.BlockSpec((F, D), const2),                                   # w2
            pl.BlockSpec((1, D), const2),                                   # b2
            pl.BlockSpec((D, D), const2),                                   # whb
            pl.BlockSpec((1, D), const2),                                   # bhb
        ],
        out_specs=pl.BlockSpec((batch_block, S, D), lambda g: (g, 0, 0)),
        compiler_params=pltpu.CompilerParams(dimension_semantics=("parallel",)),
    )(p["cw"], x, p["pos"], p["ln1_g"], p["ln1_b"], wqkv, p["wo"],
      p["ln2_g"], p["ln2_b"], p["w1"], p["b1"], p["w2"], p["b2"], whb, bhb)
    return out


def init_params(key, C, S, D, F):
    ks = jax.random.split(key, 10)
    w = lambda k, shape, s=0.02: (s * jax.random.normal(k, shape)).astype(jnp.float32)
    return dict(
        cw=(jnp.full((C,), 1.0 / C, jnp.float32) + w(ks[0], (C,), 0.01)),
        pos=w(ks[1], (S, D)),
        ln1_g=jnp.ones((1, D), jnp.float32), ln1_b=jnp.zeros((1, D), jnp.float32),
        wq=w(ks[2], (D, D)), wk=w(ks[3], (D, D)),
        wv=w(ks[4], (D, D)), wo=w(ks[5], (D, D)),
        ln2_g=jnp.ones((1, D), jnp.float32), ln2_b=jnp.zeros((1, D), jnp.float32),
        w1=w(ks[6], (D, F)), b1=jnp.zeros((1, F), jnp.float32),
        w2=w(ks[7], (F, D)), b2=jnp.zeros((1, D), jnp.float32),
        wh=w(ks[8], (S, S)), bh=jnp.zeros((1, S), jnp.float32),
    )


def reference_forward(x, p):
    """Pure-JAX reference that mirrors the original two-stage (encoder -> view ->
    head -> view) structure, used to validate the fused kernel."""
    B, C, H, W = x.shape
    S, D = H, W
    with jax.default_matmul_precision("float32"):
        tok = jnp.einsum('c,bcsd->bsd', p["cw"], x) + p["pos"][None]

        def ln(v, g, b):
            mu = jnp.mean(v, axis=-1, keepdims=True)
            var = jnp.mean((v - mu) ** 2, axis=-1, keepdims=True)
            return (v - mu) * jax.lax.rsqrt(var + 1e-5) * g + b

        h = ln(tok, p["ln1_g"], p["ln1_b"])
        q, k, v = h @ p["wq"], h @ p["wk"], h @ p["wv"]
        s = jnp.einsum('bqd,bkd->bqk', q, k) / (D ** 0.5)
        attn = jnp.einsum('bqk,bkd->bqd', jax.nn.softmax(s, axis=-1), v) @ p["wo"]
        tok = tok + attn
        h2 = ln(tok, p["ln2_g"], p["ln2_b"])
        tok = tok + (jax.nn.gelu(h2 @ p["w1"] + p["b1"]) @ p["w2"] + p["b2"])
        enc_v = jnp.reshape(tok, (B, D, S))                 # torch .view
        y = jax.nn.sigmoid(enc_v @ p["wh"] + p["bh"])
        return jnp.reshape(y, (B, S, D))                    # torch .view back


if __name__ == "__main__":
    key = jax.random.PRNGKey(0)
    B, C = 2, 3
    D_MODEL = 128          # expected_image_width  == d_model
    FF = 16                # expected_image_height == feed_forward_dimensions
    H, W = FF, D_MODEL     # image H x W ; S = H tokens of dim D = W
    S, D, F = H, W, FF

    kx, kp = jax.random.split(key)
    x = jax.random.normal(kx, (B, C, H, W), jnp.float32)
    params = init_params(kp, C, S, D, F)

    out = vit_object_detection_forward(x, params)
    out = jax.block_until_ready(out)
    assert out.shape == (B, S, D), out.shape
    assert bool(jnp.all(jnp.isfinite(out)))

    ref = reference_forward(x, params)
    err = float(jnp.max(jnp.abs(out - ref)))
    assert err < 2e-2, f"mismatch vs reference: {err}"

    print("KERNEL_OK")
</pallas_src>

<mosaic_0001>
module attributes {stable_mosaic.version = 11 : i64} {
  func.func @vit_fused_kernel(%arg0: i32, %arg1: memref<3xf32, #tpu.memory_space<smem>>, %arg2: memref<1x3x16x128xf32, #tpu.memory_space<vmem>>, %arg3: memref<16x128xf32, #tpu.memory_space<vmem>>, %arg4: memref<1x128xf32, #tpu.memory_space<vmem>>, %arg5: memref<1x128xf32, #tpu.memory_space<vmem>>, %arg6: memref<128x384xf32, #tpu.memory_space<vmem>>, %arg7: memref<128x128xf32, #tpu.memory_space<vmem>>, %arg8: memref<1x128xf32, #tpu.memory_space<vmem>>, %arg9: memref<1x128xf32, #tpu.memory_space<vmem>>, %arg10: memref<128x16xf32, #tpu.memory_space<vmem>>, %arg11: memref<1x16xf32, #tpu.memory_space<vmem>>, %arg12: memref<16x128xf32, #tpu.memory_space<vmem>>, %arg13: memref<1x128xf32, #tpu.memory_space<vmem>>, %arg14: memref<128x128xf32, #tpu.memory_space<vmem>>, %arg15: memref<1x128xf32, #tpu.memory_space<vmem>>, %arg16: memref<1x16x128xf32, #tpu.memory_space<vmem>>) attributes {dimension_semantics = [#tpu.dimension_semantics<parallel>], iteration_bounds = array<i64: 2>, scalar_prefetch = 0 : i64, scratch_operands = 0 : i64, tpu.core_type = #tpu.core_type<tc>, window_params = [{transform_indices = @transform_0, window_bounds = array<i64: 3>}, {transform_indices = @transform_1, window_bounds = array<i64: 1, 3, 16, 128>}, {pipeline_mode = #tpu.pipeline_mode<synchronous>, transform_indices = @transform_2, window_bounds = array<i64: 16, 128>}, {pipeline_mode = #tpu.pipeline_mode<synchronous>, transform_indices = @transform_3, window_bounds = array<i64: 1, 128>}, {pipeline_mode = #tpu.pipeline_mode<synchronous>, transform_indices = @transform_4, window_bounds = array<i64: 1, 128>}, {pipeline_mode = #tpu.pipeline_mode<synchronous>, transform_indices = @transform_5, window_bounds = array<i64: 128, 384>}, {pipeline_mode = #tpu.pipeline_mode<synchronous>, transform_indices = @transform_6, window_bounds = array<i64: 128, 128>}, {pipeline_mode = #tpu.pipeline_mode<synchronous>, transform_indices = @transform_7, window_bounds = array<i64: 1, 128>}, {pipeline_mode = #tpu.pipeline_mode<synchronous>, transform_indices = @transform_8, window_bounds = array<i64: 1, 128>}, {pipeline_mode = #tpu.pipeline_mode<synchronous>, transform_indices = @transform_9, window_bounds = array<i64: 128, 16>}, {pipeline_mode = #tpu.pipeline_mode<synchronous>, transform_indices = @transform_10, window_bounds = array<i64: 1, 16>}, {pipeline_mode = #tpu.pipeline_mode<synchronous>, transform_indices = @transform_11, window_bounds = array<i64: 16, 128>}, {pipeline_mode = #tpu.pipeline_mode<synchronous>, transform_indices = @transform_12, window_bounds = array<i64: 1, 128>}, {pipeline_mode = #tpu.pipeline_mode<synchronous>, transform_indices = @transform_13, window_bounds = array<i64: 128, 128>}, {pipeline_mode = #tpu.pipeline_mode<synchronous>, transform_indices = @transform_14, window_bounds = array<i64: 1, 128>}, {transform_indices = @transform_15, window_bounds = array<i64: 1, 16, 128>}]} {
    %c0 = arith.constant 0 : index
    %c0_0 = arith.constant 0 : index
    %c0_1 = arith.constant 0 : index
    %c0_2 = arith.constant 0 : index
    %0 = vector.load %arg2[%c0, %c0_0, %c0_1, %c0_2] : memref<1x3x16x128xf32, #tpu.memory_space<vmem>>, vector<1x3x16x128xf32>
    %c0_3 = arith.constant 0 : index
    %1 = memref.load %arg1[%c0_3] : memref<3xf32, #tpu.memory_space<smem>>
    %2 = vector.extract_strided_slice %0 {offsets = [0, 0, 0, 0], sizes = [1, 1, 16, 128], strides = [1, 1, 1, 1]} : vector<1x3x16x128xf32> to vector<1x1x16x128xf32>
    %3 = vector.shape_cast %2 : vector<1x1x16x128xf32> to vector<1x16x128xf32>
    %4 = vector.broadcast %1 : f32 to vector<1x16x128xf32>
    %5 = arith.mulf %4, %3 : vector<1x16x128xf32>
    %c1 = arith.constant 1 : index
    %6 = memref.load %arg1[%c1] : memref<3xf32, #tpu.memory_space<smem>>
    %7 = vector.extract_strided_slice %0 {offsets = [0, 1, 0, 0], sizes = [1, 1, 16, 128], strides = [1, 1, 1, 1]} : vector<1x3x16x128xf32> to vector<1x1x16x128xf32>
    %8 = vector.shape_cast %7 : vector<1x1x16x128xf32> to vector<1x16x128xf32>
    %9 = vector.broadcast %6 : f32 to vector<1x16x128xf32>
    %10 = arith.mulf %9, %8 : vector<1x16x128xf32>
    %11 = arith.addf %5, %10 : vector<1x16x128xf32>
    %c2 = arith.constant 2 : index
    %12 = memref.load %arg1[%c2] : memref<3xf32, #tpu.memory_space<smem>>
    %13 = vector.extract_strided_slice %0 {offsets = [0, 2, 0, 0], sizes = [1, 1, 16, 128], strides = [1, 1, 1, 1]} : vector<1x3x16x128xf32> to vector<1x1x16x128xf32>
    %14 = vector.shape_cast %13 : vector<1x1x16x128xf32> to vector<1x16x128xf32>
    %15 = vector.broadcast %12 : f32 to vector<1x16x128xf32>
    %16 = arith.mulf %15, %14 : vector<1x16x128xf32>
    %17 = arith.addf %11, %16 : vector<1x16x128xf32>
    %c0_4 = arith.constant 0 : index
    %c0_5 = arith.constant 0 : index
    %18 = vector.load %arg3[%c0_4, %c0_5] : memref<16x128xf32, #tpu.memory_space<vmem>>, vector<16x128xf32>
    %19 = vector.shape_cast %18 : vector<16x128xf32> to vector<1x16x128xf32>
    %20 = arith.addf %17, %19 : vector<1x16x128xf32>
    %21 = vector.shape_cast %20 : vector<1x16x128xf32> to vector<16x128xf32>
    %c0_6 = arith.constant 0 : index
    %c0_7 = arith.constant 0 : index
    %22 = vector.load %arg4[%c0_6, %c0_7] : memref<1x128xf32, #tpu.memory_space<vmem>>, vector<1x128xf32>
    %c0_8 = arith.constant 0 : index
    %c0_9 = arith.constant 0 : index
    %23 = vector.load %arg5[%c0_8, %c0_9] : memref<1x128xf32, #tpu.memory_space<vmem>>, vector<1x128xf32>
    %cst = arith.constant dense<0.000000e+00> : vector<16xf32>
    %24 = vector.multi_reduction <add>, %21, %cst [1] : vector<16x128xf32> to vector<16xf32>
    %25 = vector.shape_cast %24 : vector<16xf32> to vector<16x1xf32>
    %cst_10 = arith.constant 1.280000e+02 : f32
    %26 = vector.broadcast %cst_10 : f32 to vector<16x1xf32>
    %27 = arith.divf %25, %26 : vector<16x1xf32>
    %28 = vector.broadcast %27 : vector<16x1xf32> to vector<16x128xf32>
    %29 = arith.subf %21, %28 : vector<16x128xf32>
    %30 = arith.mulf %29, %29 : vector<16x128xf32>
    %cst_11 = arith.constant dense<0.000000e+00> : vector<16xf32>
    %31 = vector.multi_reduction <add>, %30, %cst_11 [1] : vector<16x128xf32> to vector<16xf32>
    %32 = vector.shape_cast %31 : vector<16xf32> to vector<16x1xf32>
    %cst_12 = arith.constant 1.280000e+02 : f32
    %33 = vector.broadcast %cst_12 : f32 to vector<16x1xf32>
    %34 = arith.divf %32, %33 : vector<16x1xf32>
    %35 = vector.broadcast %27 : vector<16x1xf32> to vector<16x128xf32>
    %36 = arith.subf %21, %35 : vector<16x128xf32>
    %cst_13 = arith.constant 9.99999974E-6 : f32
    %37 = vector.broadcast %cst_13 : f32 to vector<16x1xf32>
    %38 = arith.addf %34, %37 : vector<16x1xf32>
    %39 = math.rsqrt %38 : vector<16x1xf32>
    %40 = vector.broadcast %39 : vector<16x1xf32> to vector<16x128xf32>
    %41 = arith.mulf %36, %40 : vector<16x128xf32>
    %42 = vector.broadcast %22 : vector<1x128xf32> to vector<16x128xf32>
    %43 = arith.mulf %41, %42 : vector<16x128xf32>
    %44 = vector.broadcast %23 : vector<1x128xf32> to vector<16x128xf32>
    %45 = arith.addf %43, %44 : vector<16x128xf32>
    %c0_14 = arith.constant 0 : index
    %c0_15 = arith.constant 0 : index
    %46 = vector.load %arg6[%c0_14, %c0_15] : memref<128x384xf32, #tpu.memory_space<vmem>>, vector<128x384xf32>
    %cst_16 = arith.constant dense<0.000000e+00> : vector<16x384xf32>
    %47 = tpu.matmul %45, %46, %cst_16 {dimension_numbers = #tpu.dot_dimension_numbers<[1], [0], [0], [1], [0, 0, 1, 1], [], []>} : vector<16x128xf32>, vector<128x384xf32>, vector<16x384xf32> -> vector<16x384xf32>
    %48 = vector.extract_strided_slice %47 {offsets = [0, 0], sizes = [16, 128], strides = [1, 1]} : vector<16x384xf32> to vector<16x128xf32>
    %49 = vector.shape_cast %48 : vector<16x128xf32> to vector<1x16x128xf32>
    %50 = vector.extract_strided_slice %47 {offsets = [0, 128], sizes = [16, 128], strides = [1, 1]} : vector<16x384xf32> to vector<16x128xf32>
    %51 = vector.shape_cast %50 : vector<16x128xf32> to vector<1x16x128xf32>
    %52 = vector.extract_strided_slice %47 {offsets = [0, 256], sizes = [16, 128], strides = [1, 1]} : vector<16x384xf32> to vector<16x128xf32>
    %53 = vector.shape_cast %52 : vector<16x128xf32> to vector<1x16x128xf32>
    "tpu.trace_start"() <{level = 10 : i32, message = "bqd,bkd->bqk"}> : () -> ()
    %cst_17 = arith.constant dense<0.000000e+00> : vector<1x16x16xf32>
    %54 = tpu.matmul %49, %51, %cst_17 {dimension_numbers = #tpu.dot_dimension_numbers<[2], [2], [1], [1], [0, 0, 0, 1, 1, 1], [0], [0]>} : vector<1x16x128xf32>, vector<1x16x128xf32>, vector<1x16x16xf32> -> vector<1x16x16xf32>
    "tpu.trace_stop"() : () -> ()
    %cst_18 = arith.constant 0.0883883461 : f32
    %55 = vector.broadcast %cst_18 : f32 to vector<1x16x16xf32>
    %56 = arith.mulf %54, %55 : vector<1x16x16xf32>
    %cst_19 = arith.constant dense<0xFF800000> : vector<1x16xf32>
    %57 = vector.multi_reduction <maximumf>, %56, %cst_19 [2] : vector<1x16x16xf32> to vector<1x16xf32>
    %58 = vector.shape_cast %57 : vector<1x16xf32> to vector<1x16x1xf32>
    %59 = vector.broadcast %58 : vector<1x16x1xf32> to vector<1x16x16xf32>
    %60 = arith.subf %56, %59 : vector<1x16x16xf32>
    %61 = math.exp %60 : vector<1x16x16xf32>
    %cst_20 = arith.constant dense<0.000000e+00> : vector<1x16xf32>
    %62 = vector.multi_reduction <add>, %61, %cst_20 [2] : vector<1x16x16xf32> to vector<1x16xf32>
    %63 = vector.shape_cast %62 : vector<1x16xf32> to vector<1x16x1xf32>
    %64 = tpu.reciprocal %63 {approx = true} : vector<1x16x1xf32> -> vector<1x16x1xf32>
    %65 = vector.broadcast %64 : vector<1x16x1xf32> to vector<1x16x16xf32>
    %66 = arith.mulf %61, %65 : vector<1x16x16xf32>
    "tpu.trace_start"() <{level = 10 : i32, message = "bqk,bkd->bqd"}> : () -> ()
    %cst_21 = arith.constant dense<0.000000e+00> : vector<1x16x128xf32>
    %67 = tpu.matmul %66, %53, %cst_21 {dimension_numbers = #tpu.dot_dimension_numbers<[2], [1], [1], [2], [0, 0, 0, 1, 1, 2], [0], [0]>} : vector<1x16x16xf32>, vector<1x16x128xf32>, vector<1x16x128xf32> -> vector<1x16x128xf32>
    "tpu.trace_stop"() : () -> ()
    %68 = vector.shape_cast %67 : vector<1x16x128xf32> to vector<16x128xf32>
    %c0_22 = arith.constant 0 : index
    %c0_23 = arith.constant 0 : index
    %69 = vector.load %arg7[%c0_22, %c0_23] : memref<128x128xf32, #tpu.memory_space<vmem>>, vector<128x128xf32>
    %cst_24 = arith.constant dense<0.000000e+00> : vector<16x128xf32>
    %70 = tpu.matmul %68, %69, %cst_24 {dimension_numbers = #tpu.dot_dimension_numbers<[1], [0], [0], [1], [0, 0, 1, 1], [], []>} : vector<16x128xf32>, vector<128x128xf32>, vector<16x128xf32> -> vector<16x128xf32>
    %71 = arith.addf %21, %70 : vector<16x128xf32>
    %c0_25 = arith.constant 0 : index
    %c0_26 = arith.constant 0 : index
    %72 = vector.load %arg8[%c0_25, %c0_26] : memref<1x128xf32, #tpu.memory_space<vmem>>, vector<1x128xf32>
    %c0_27 = arith.constant 0 : index
    %c0_28 = arith.constant 0 : index
    %73 = vector.load %arg9[%c0_27, %c0_28] : memref<1x128xf32, #tpu.memory_space<vmem>>, vector<1x128xf32>
    %cst_29 = arith.constant dense<0.000000e+00> : vector<16xf32>
    %74 = vector.multi_reduction <add>, %71, %cst_29 [1] : vector<16x128xf32> to vector<16xf32>
    %75 = vector.shape_cast %74 : vector<16xf32> to vector<16x1xf32>
    %cst_30 = arith.constant 1.280000e+02 : f32
    %76 = vector.broadcast %cst_30 : f32 to vector<16x1xf32>
    %77 = arith.divf %75, %76 : vector<16x1xf32>
    %78 = vector.broadcast %77 : vector<16x1xf32> to vector<16x128xf32>
    %79 = arith.subf %71, %78 : vector<16x128xf32>
    %80 = arith.mulf %79, %79 : vector<16x128xf32>
    %cst_31 = arith.constant dense<0.000000e+00> : vector<16xf32>
    %81 = vector.multi_reduction <add>, %80, %cst_31 [1] : vector<16x128xf32> to vector<16xf32>
    %82 = vector.shape_cast %81 : vector<16xf32> to vector<16x1xf32>
    %cst_32 = arith.constant 1.280000e+02 : f32
    %83 = vector.broadcast %cst_32 : f32 to vector<16x1xf32>
    %84 = arith.divf %82, %83 : vector<16x1xf32>
    %85 = vector.broadcast %77 : vector<16x1xf32> to vector<16x128xf32>
    %86 = arith.subf %71, %85 : vector<16x128xf32>
    %cst_33 = arith.constant 9.99999974E-6 : f32
    %87 = vector.broadcast %cst_33 : f32 to vector<16x1xf32>
    %88 = arith.addf %84, %87 : vector<16x1xf32>
    %89 = math.rsqrt %88 : vector<16x1xf32>
    %90 = vector.broadcast %89 : vector<16x1xf32> to vector<16x128xf32>
    %91 = arith.mulf %86, %90 : vector<16x128xf32>
    %92 = vector.broadcast %72 : vector<1x128xf32> to vector<16x128xf32>
    %93 = arith.mulf %91, %92 : vector<16x128xf32>
    %94 = vector.broadcast %73 : vector<1x128xf32> to vector<16x128xf32>
    %95 = arith.addf %93, %94 : vector<16x128xf32>
    %c0_34 = arith.constant 0 : index
    %c0_35 = arith.constant 0 : index
    %96 = vector.load %arg10[%c0_34, %c0_35] : memref<128x16xf32, #tpu.memory_space<vmem>>, vector<128x16xf32>
    %cst_36 = arith.constant dense<0.000000e+00> : vector<16x16xf32>
    %97 = tpu.matmul %95, %96, %cst_36 {dimension_numbers = #tpu.dot_dimension_numbers<[1], [0], [0], [1], [0, 0, 1, 1], [], []>} : vector<16x128xf32>, vector<128x16xf32>, vector<16x16xf32> -> vector<16x16xf32>
    %c0_37 = arith.constant 0 : index
    %c0_38 = arith.constant 0 : index
    %98 = vector.load %arg11[%c0_37, %c0_38] : memref<1x16xf32, #tpu.memory_space<vmem>>, vector<1x16xf32>
    %99 = vector.broadcast %98 : vector<1x16xf32> to vector<16x16xf32>
    %100 = arith.addf %97, %99 : vector<16x16xf32>
    %101 = arith.mulf %100, %100 : vector<16x16xf32>
    %102 = arith.mulf %100, %101 : vector<16x16xf32>
    %cst_39 = arith.constant 4.471500e-02 : f32
    %103 = vector.broadcast %cst_39 : f32 to vector<16x16xf32>
    %104 = arith.mulf %103, %102 : vector<16x16xf32>
    %105 = arith.addf %100, %104 : vector<16x16xf32>
    %cst_40 = arith.constant 0.797884583 : f32
    %106 = vector.broadcast %cst_40 : f32 to vector<16x16xf32>
    %107 = arith.mulf %106, %105 : vector<16x16xf32>
    %108 = math.tanh %107 : vector<16x16xf32>
    %cst_41 = arith.constant 1.000000e+00 : f32
    %109 = vector.broadcast %cst_41 : f32 to vector<16x16xf32>
    %110 = arith.addf %109, %108 : vector<16x16xf32>
    %cst_42 = arith.constant 5.000000e-01 : f32
    %111 = vector.broadcast %cst_42 : f32 to vector<16x16xf32>
    %112 = arith.mulf %111, %110 : vector<16x16xf32>
    %113 = arith.mulf %100, %112 : vector<16x16xf32>
    %c0_43 = arith.constant 0 : index
    %c0_44 = arith.constant 0 : index
    %114 = vector.load %arg12[%c0_43, %c0_44] : memref<16x128xf32, #tpu.memory_space<vmem>>, vector<16x128xf32>
    %cst_45 = arith.constant dense<0.000000e+00> : vector<16x128xf32>
    %115 = tpu.matmul %113, %114, %cst_45 {dimension_numbers = #tpu.dot_dimension_numbers<[1], [0], [0], [1], [0, 0, 1, 1], [], []>} : vector<16x16xf32>, vector<16x128xf32>, vector<16x128xf32> -> vector<16x128xf32>
    %c0_46 = arith.constant 0 : index
    %c0_47 = arith.constant 0 : index
    %116 = vector.load %arg13[%c0_46, %c0_47] : memref<1x128xf32, #tpu.memory_space<vmem>>, vector<1x128xf32>
    %117 = vector.broadcast %116 : vector<1x128xf32> to vector<16x128xf32>
    %118 = arith.addf %115, %117 : vector<16x128xf32>
    %119 = arith.addf %71, %118 : vector<16x128xf32>
    %c0_48 = arith.constant 0 : index
    %c0_49 = arith.constant 0 : index
    %120 = vector.load %arg14[%c0_48, %c0_49] : memref<128x128xf32, #tpu.memory_space<vmem>>, vector<128x128xf32>
    %cst_50 = arith.constant dense<0.000000e+00> : vector<16x128xf32>
    %121 = tpu.matmul %119, %120, %cst_50 {dimension_numbers = #tpu.dot_dimension_numbers<[1], [0], [0], [1], [0, 0, 1, 1], [], []>} : vector<16x128xf32>, vector<128x128xf32>, vector<16x128xf32> -> vector<16x128xf32>
    %c0_51 = arith.constant 0 : index
    %c0_52 = arith.constant 0 : index
    %122 = vector.load %arg15[%c0_51, %c0_52] : memref<1x128xf32, #tpu.memory_space<vmem>>, vector<1x128xf32>
    %123 = vector.broadcast %122 : vector<1x128xf32> to vector<16x128xf32>
    %124 = arith.addf %121, %123 : vector<16x128xf32>
    %125 = arith.negf %124 : vector<16x128xf32>
    %126 = math.exp %125 : vector<16x128xf32>
    %cst_53 = arith.constant 1.000000e+00 : f32
    %127 = vector.broadcast %cst_53 : f32 to vector<16x128xf32>
    %128 = arith.addf %127, %126 : vector<16x128xf32>
    %129 = arith.divf %127, %128 : vector<16x128xf32>
    %130 = vector.shape_cast %129 : vector<16x128xf32> to vector<1x16x128xf32>
    %c0_54 = arith.constant 0 : index
    %c0_55 = arith.constant 0 : index
    %c0_56 = arith.constant 0 : index
    %131 = vector.load %arg16[%c0_54, %c0_55, %c0_56] : memref<1x16x128xf32, #tpu.memory_space<vmem>>, vector<1x16x128xf32>
    tpu.vector_store %arg16[%c0_54, %c0_55, %c0_56], %130 {strides = array<i32>} : memref<1x16x128xf32, #tpu.memory_space<vmem>>, vector<1x16x128xf32>,
    return
  }
  func.func @transform_0(%arg0: i32) -> i32 {
    %c0_i32 = arith.constant 0 : i32
    %c0_i32_0 = arith.constant 0 : i32
    return %c0_i32 : i32
  }
  func.func @transform_1(%arg0: i32) -> (i32, i32, i32, i32) {
    %c0_i32 = arith.constant 0 : i32
    %c0_i32_0 = arith.constant 0 : i32
    %c0_i32_1 = arith.constant 0 : i32
    %c0_i32_2 = arith.constant 0 : i32
    return %arg0, %c0_i32, %c0_i32_0, %c0_i32_1 : i32, i32, i32, i32
  }
  func.func @transform_2(%arg0: i32) -> (i32, i32) {
    %c0_i32 = arith.constant 0 : i32
    %c0_i32_0 = arith.constant 0 : i32
    %c0_i32_1 = arith.constant 0 : i32
    return %c0_i32, %c0_i32_0 : i32, i32
  }
  func.func @transform_3(%arg0: i32) -> (i32, i32) {
    %c0_i32 = arith.constant 0 : i32
    %c0_i32_0 = arith.constant 0 : i32
    %c0_i32_1 = arith.constant 0 : i32
    return %c0_i32, %c0_i32_0 : i32, i32
  }
  func.func @transform_4(%arg0: i32) -> (i32, i32) {
    %c0_i32 = arith.constant 0 : i32
    %c0_i32_0 = arith.constant 0 : i32
    %c0_i32_1 = arith.constant 0 : i32
    return %c0_i32, %c0_i32_0 : i32, i32
  }
  func.func @transform_5(%arg0: i32) -> (i32, i32) {
    %c0_i32 = arith.constant 0 : i32
    %c0_i32_0 = arith.constant 0 : i32
    %c0_i32_1 = arith.constant 0 : i32
    return %c0_i32, %c0_i32_0 : i32, i32
  }
  func.func @transform_6(%arg0: i32) -> (i32, i32) {
    %c0_i32 = arith.constant 0 : i32
    %c0_i32_0 = arith.constant 0 : i32
    %c0_i32_1 = arith.constant 0 : i32
    return %c0_i32, %c0_i32_0 : i32, i32
  }
  func.func @transform_7(%arg0: i32) -> (i32, i32) {
    %c0_i32 = arith.constant 0 : i32
    %c0_i32_0 = arith.constant 0 : i32
    %c0_i32_1 = arith.constant 0 : i32
    return %c0_i32, %c0_i32_0 : i32, i32
  }
  func.func @transform_8(%arg0: i32) -> (i32, i32) {
    %c0_i32 = arith.constant 0 : i32
    %c0_i32_0 = arith.constant 0 : i32
    %c0_i32_1 = arith.constant 0 : i32
    return %c0_i32, %c0_i32_0 : i32, i32
  }
  func.func @transform_9(%arg0: i32) -> (i32, i32) {
    %c0_i32 = arith.constant 0 : i32
    %c0_i32_0 = arith.constant 0 : i32
    %c0_i32_1 = arith.constant 0 : i32
    return %c0_i32, %c0_i32_0 : i32, i32
  }
  func.func @transform_10(%arg0: i32) -> (i32, i32) {
    %c0_i32 = arith.constant 0 : i32
    %c0_i32_0 = arith.constant 0 : i32
    %c0_i32_1 = arith.constant 0 : i32
    return %c0_i32, %c0_i32_0 : i32, i32
  }
  func.func @transform_11(%arg0: i32) -> (i32, i32) {
    %c0_i32 = arith.constant 0 : i32
    %c0_i32_0 = arith.constant 0 : i32
    %c0_i32_1 = arith.constant 0 : i32
    return %c0_i32, %c0_i32_0 : i32, i32
  }
  func.func @transform_12(%arg0: i32) -> (i32, i32) {
    %c0_i32 = arith.constant 0 : i32
    %c0_i32_0 = arith.constant 0 : i32
    %c0_i32_1 = arith.constant 0 : i32
    return %c0_i32, %c0_i32_0 : i32, i32
  }
  func.func @transform_13(%arg0: i32) -> (i32, i32) {
    %c0_i32 = arith.constant 0 : i32
    %c0_i32_0 = arith.constant 0 : i32
    %c0_i32_1 = arith.constant 0 : i32
    return %c0_i32, %c0_i32_0 : i32, i32
  }
  func.func @transform_14(%arg0: i32) -> (i32, i32) {
    %c0_i32 = arith.constant 0 : i32
    %c0_i32_0 = arith.constant 0 : i32
    %c0_i32_1 = arith.constant 0 : i32
    return %c0_i32, %c0_i32_0 : i32, i32
  }
  func.func @transform_15(%arg0: i32) -> (i32, i32, i32) {
    %c0_i32 = arith.constant 0 : i32
    %c0_i32_0 = arith.constant 0 : i32
    %c0_i32_1 = arith.constant 0 : i32
    return %arg0, %c0_i32, %c0_i32_0 : i32, i32, i32
  }
}

</mosaic_0001>

<bundles_post_ra>
// kernel: tpu_custom_call.1
= control target key start
LH: loop header
LB: loop body
LE: loop exit
PB: predicated region body
PF: predicated region fallthrough
CT: control target
= control target key end

     0   :  { %s3096_s0 = inlined_call_operand.vmem [shape: f32[3], index: 0, kind: input, shape index: {}]   ;;  %s3097_s1 = inlined_call_operand.hbm [shape: f32[2,3,16,128], index: 1, kind: input, shape index: {}]   ;;  %s3098_s2 = inlined_call_operand.vmem [shape: f32[16,128], index: 2, kind: input, shape index: {}]   ;;  %s3099_s3 = inlined_call_operand.vmem [shape: f32[1,128], index: 3, kind: input, shape index: {}]   ;;  %s3100_s4 = inlined_call_operand.hbm [shape: f32[1,128], index: 4, kind: input, shape index: {}]   ;;  %s3101_s5 = inlined_call_operand.hbm [shape: f32[128,384], index: 5, kind: input, shape index: {}]   ;;  %s3102_s6 = inlined_call_operand.vmem [shape: f32[128,128], index: 6, kind: input, shape index: {}]   ;;  %s3103_s7 = inlined_call_operand.hbm [shape: f32[1,128], index: 7, kind: input, shape index: {}]   ;;  %s3104_s8 = inlined_call_operand.hbm [shape: f32[1,128], index: 8, kind: input, shape index: {}]   ;;  %s3105_s9 = inlined_call_operand.vmem [shape: f32[128,16], index: 9, kind: input, shape index: {}]   ;;  %s3106_s10 = inlined_call_operand.vmem [shape: f32[1,16], index: 10, kind: input, shape index: {}]   ;;  %s3107_s11 = inlined_call_operand.vmem [shape: f32[16,128], index: 11, kind: input, shape index: {}]   ;;  %s3108_s12 = inlined_call_operand.vmem [shape: f32[1,128], index: 12, kind: input, shape index: {}]   ;;  %s3109_s13 = inlined_call_operand.hbm [shape: f32[128,128], index: 13, kind: input, shape index: {}]   ;;  %s3110_s14 = inlined_call_operand.vmem [shape: f32[1,128], index: 14, kind: input, shape index: {}]   ;;  %s3111_s15 = inlined_call_operand.hbm [shape: f32[2,16,128], index: 15, kind: output, shape index: {}]  }
   0x1   :  { %3119 = sst [smem:[#allocation22_spill]] %s3096_s0 }
   0x2   :  { %3120 = sst [smem:[#allocation23_spill]] %s3100_s4 }
   0x3   :  { %3121 = sst [smem:[#allocation24_spill]] %s3101_s5 }
   0x4   :  { %3122 = sst [smem:[#allocation25_spill]] %s3103_s7 }
   0x5   :  { %3123 = sst [smem:[#allocation26_spill]] %s3106_s10 }
   0x6   :  { %3124 = sst [smem:[#allocation27_spill]] %s3107_s11 }
   0x7   :  { %3125 = sst [smem:[#allocation28_spill]] %s3108_s12 }
   0x8   :  { %3126 = sst [smem:[#allocation29_spill]] %s3110_s14 }
   0x9   :  { %3127 = sst [smem:[#allocation30_spill]] %s3111_s15 }
   0xa   :  { %20 = vsyncpa [#allocation5], 0 }
   0xb   :  { %21 = vsyncpa [#allocation3], 0 }
   0xc   :  { %23 = vsyncpa [#allocation3 + $0x1], 0 }
   0xd   :  { %24 = vsyncpa [#allocation8], 0 }
   0xe   :  { %25 = vsyncpa [#allocation11], 0 }
   0xf   :  { %26 = vsyncpa [#allocation14], 0 }
  0x10   :  { %27 = vsyncpa [#allocation4], 0 }
  0x11   :  { %29 = vsyncpa [#allocation4 + $0x1], 0  ;;  %s2607_s18 = smov 0   ;;  %s2609_s19 = smov 0  }
  0x12   :  { %s2611_s20 = smov 0   ;;  %s2613_s21 = smov 0  }
  0x13 LB: > { %s2512_s22 = smov [#allocation7]   ;;  %s2628_s24 = sadd.s32 4294967295, %s2510_s21   ;;  %s2510_s21 = sphi %s2613_s21, %s3162_s21   ;;  %s2506_s20 = sphi %s2611_s20, %s3161_s20   ;;  %s2502_s19 = sphi %s2609_s19, %s3160_s19   ;;  %s2498_s18 = sphi %s2607_s18, %s3159_s18  }
  0x14   : > { %s416_s23 = sshll.u32 %s2512_s22, 4  ;;  %p1643_p0 = scmp.ge.s32.totalorder %s2510_s21, 1  ;;  %s2633_s23 = int_to_ptr.vmem [resolvable:$true] %s416_s23 }
  0x15   : > { %p3114_p1 = scmp.eq.s32.totalorder %s2628_s24, 0  ;;  %p386_p2 = scmp.lt.s32.totalorder %s2510_s21, 3 }
  0x16   : > { %s3129_s0 = sld [smem:[#allocation22_spill]]  ;;  %s2513_s29 = smov [#allocation10]  }
  0x17   : > { %p2635_p3 = pnand %p1643_p0, %p386_p2  ;;  %s443_s30 = sshll.u32 %s2513_s29, 4  ;;  %s2645_s30 = int_to_ptr.vmem [resolvable:$true] %s443_s30 }
  0x18   : > { %s2514_s17 = smov [#allocation9]   ;;  %s3131_s4 = sld [smem:[#allocation23_spill]] }
  0x19   : > { %s3128_s25 = scalar_select %p2635_p3, 1, 0 }
  0x1a   : > { %p2129_p5 = pneg %p2635_p3  ;;  %s2655_s22 = sshll.u32 %s2514_s17, 4  ;;  %s427_s22 = int_to_ptr.vmem [resolvable:$true] %s2655_s22 }
  0x1c   : > { %s399_s28 = sshll.u32 %s3129_s0, 4  ;;  %p2651_p6 = pnand %p2129_p5, %p3114_p1  ;;  %s2647_s28 = int_to_ptr.vmem [resolvable:$true] %s399_s28 }
  0x1e   : > { %s2243_s27 = scalar_lea.hbm %s3131_s4, 16  ;;  %p2665_p8 = pneg %p2651_p6 }
  0x1f   : > { %p2244_p7 = scmp.ne.s32.totalorder %s3131_s4, %s2243_s27  ;;  %p2250_p11 = scmp.lt.u32.totalorder %s2243_s27, %s3131_s4 }
  0x21   : > { %p2246_p9 = pnand %p2665_p8, %p2244_p7 }
  0x23   : > { %p2247_p10 = pneg %p2246_p9 }
  0x25   : > { %p2252_p12 = pnand %p2250_p11, %p2247_p10 }
  0x27   : > { %2255 = shalt.err (!%p2252_p12)
}
  0x28   : > { %s2256_s0 = scalar_lea.vmem %s2633_s23, 16  ;;  %s2263_s14 = scalar_lea.vmem %s2633_s23, 32 }
  0x29   : > { %p2257_p13 = scmp.ne.s32.totalorder %s2633_s23, %s2256_s0  ;;  %p2264_p5 = scmp.lt.s32.totalorder %s2633_s23, %s2633_s23 }
  0x2a   : > { %p2265_p7 = scmp.lt.s32.totalorder %s2263_s14, %s2256_s0 }
  0x2b   : > { %p2259_p0 = pnand %p2257_p13, %p2665_p8 }
  0x2c   : > { %p2266_p9 = por %p2265_p7, %p2264_p5 }
  0x2d   : > { %p2260_p2 = pneg %p2259_p0 }
  0x2f   : > { %p2267_p4 = pnand %p2266_p9, %p2260_p2 }
  0x31   : > { %2270 = shalt.err (!%p2267_p4)
}
  0x32   : > { %2135 = dma.hbm_to_vmem [thread:$0]  (!%p2651_p6), %s3131_s4, 16, %s2633_s23, [#allocation8]  }
  0x33   : > { %s3133_s7 = sld [smem:[#allocation25_spill]] }
  0x39   : > { %s2271_s17 = scalar_lea.hbm %s3133_s7, 16 }
  0x3a   : > { %p2272_p10 = scmp.ne.s32.totalorder %s3133_s7, %s2271_s17  ;;  %p2278_p4 = scmp.lt.u32.totalorder %s2271_s17, %s3133_s7 }
  0x3c   : > { %p2274_p11 = pnand %p2272_p10, %p2665_p8 }
  0x3e   : > { %p2275_p12 = pneg %p2274_p11 }
  0x40   : > { %p2280_p13 = pnand %p2278_p4, %p2275_p12 }
  0x42   : > { %2283 = shalt.err (!%p2280_p13)
}
  0x43   : > { %s2284_s23 = scalar_lea.vmem %s2645_s30, 16  ;;  %s2291_s10 = scalar_lea.vmem %s2645_s30, 32 }
  0x44   : > { %p2285_p0 = scmp.ne.s32.totalorder %s2645_s30, %s2284_s23  ;;  %p2292_p7 = scmp.lt.s32.totalorder %s2645_s30, %s2645_s30 }
  0x45   : > { %p2293_p9 = scmp.lt.s32.totalorder %s2291_s10, %s2284_s23 }
  0x46   : > { %p2287_p2 = pnand %p2285_p0, %p2665_p8 }
  0x47   : > { %p2294_p10 = por %p2293_p9, %p2292_p7 }
  0x48   : > { %p2288_p5 = pneg %p2287_p2 }
  0x4a   : > { %p2295_p11 = pnand %p2294_p10, %p2288_p5 }
  0x4c   : > { %2298 = shalt.err (!%p2295_p11)
}
  0x4d   : > { %2141 = dma.hbm_to_vmem [thread:$0]  (!%p2651_p6), %s3133_s7, 16, %s2645_s30, [#allocation11]  }
  0x4e   : > { %s2299_s15 = scalar_lea.vmem %s2647_s28, 16  ;;  %p2307_p0 = scmp.lt.s32.totalorder %s2647_s28, %s2647_s28 }
  0x4f   : > { %p2300_p12 = scmp.ne.s32.totalorder %s2647_s28, %s2299_s15  ;;  %p2308_p2 = scmp.lt.s32.totalorder %s2299_s15, %s2299_s15 }
  0x51   : > { %p2302_p4 = pnand %p2300_p12, %p2665_p8  ;;  %p2309_p5 = por %p2308_p2, %p2307_p0 }
  0x53   : > { %p2303_p13 = pneg %p2302_p4 }
  0x55   : > { %p2310_p7 = pnand %p2309_p5, %p2303_p13 }
  0x57   : > { %2313 = shalt.err (!%p2310_p7)
}
  0x58   : > { %s2515_s26 = smov [#allocation2]   ;;  %s3134_s5 = sld [smem:[#allocation24_spill]] }
  0x59   : > { %2132 = dma.vmem_to_smem (!%p2651_p6), %s2647_s28, 16, %s2515_s26, [#allocation5]  }
  0x5e   : > { %s2314_s17 = scalar_lea.hbm %s3134_s5, 6144 }
  0x5f   : > { %p2315_p9 = scmp.ne.s32.totalorder %s3134_s5, %s2314_s17  ;;  %p2321_p12 = scmp.lt.u32.totalorder %s2314_s17, %s3134_s5 }
  0x61   : > { %p2317_p10 = pnand %p2315_p9, %p2665_p8 }
  0x63   : > { %p2318_p11 = pneg %p2317_p10 }
  0x65   : > { %p2323_p4 = pnand %p2321_p12, %p2318_p11 }
  0x67   : > { %2326 = shalt.err (!%p2323_p4)
}
  0x68   : > { %s2327_s11 = scalar_lea.vmem %s427_s22, 6144  ;;  %p2335_p5 = scmp.lt.s32.totalorder %s427_s22, %s427_s22 }
  0x69   : > { %p2328_p13 = scmp.ne.s32.totalorder %s427_s22, %s2327_s11  ;;  %p2336_p7 = scmp.lt.s32.totalorder %s2327_s11, %s2327_s11 }
  0x6b   : > { %p2330_p0 = pnand %p2328_p13, %p2665_p8  ;;  %p2337_p1 = por %p2336_p7, %p2335_p5 }
  0x6d   : > { %p2331_p2 = pneg %p2330_p0 }
  0x6f   : > { %p2338_p3 = pnand %p2337_p1, %p2331_p2 }
  0x71   : > { %2341 = shalt.err (!%p2338_p3)
}
  0x72   : > { %s2516_s28 = smov 384   ;;  %s2517_s12 = smov 24  }
  0x73   : > { %2138 = dma.hbm_to_vmem [thread:$0]  (!%p2651_p6), %s3134_s5, 6144, %s427_s22, [#allocation8], %s2516_s28, %s2516_s28, %s2517_s12  }
  0x74   : > { %s2518_s30 = smov [#allocation12]   ;;  %s2519_s17 = smov [#allocation13]  }
  0x75   : > { %s454_s27 = sshll.u32 %s2518_s30, 4  ;;  %s476_s0 = sshll.u32 %s2519_s17, 4  ;;  %s455_s27 = int_to_ptr.vmem [resolvable:$true] %s454_s27  ;;  %s2739_s0 = int_to_ptr.vmem [resolvable:$true] %s476_s0 }
  0x76   : > { %s2342_s10 = scalar_lea.hbm %s3104_s8, 16 }
  0x77   : > { %p2343_p1 = scmp.ne.s32.totalorder %s3104_s8, %s2342_s10  ;;  %p2349_p10 = scmp.lt.u32.totalorder %s2342_s10, %s3104_s8 }
  0x79   : > { %p2345_p3 = pnand %p2343_p1, %p2665_p8 }
  0x7b   : > { %p2346_p9 = pneg %p2345_p3 }
  0x7d   : > { %p2351_p11 = pnand %p2349_p10, %p2346_p9 }
  0x7f   : > { %2354 = shalt.err (!%p2351_p11)
}
  0x80   : > { %s2355_s28 = scalar_lea.vmem %s455_s27, 16  ;;  %s2362_s12 = scalar_lea.vmem %s455_s27, 32 }
  0x81   : > { %p2356_p12 = scmp.ne.s32.totalorder %s455_s27, %s2355_s28  ;;  %p2363_p0 = scmp.lt.s32.totalorder %s455_s27, %s455_s27 }
  0x82   : > { %p2364_p2 = scmp.lt.s32.totalorder %s2362_s12, %s2355_s28 }
  0x83   : > { %p2358_p4 = pnand %p2356_p12, %p2665_p8 }
  0x84   : > { %p2365_p5 = por %p2364_p2, %p2363_p0 }
  0x85   : > { %p2359_p13 = pneg %p2358_p4 }
  0x87   : > { %p2366_p7 = pnand %p2365_p5, %p2359_p13 }
  0x89   : > { %2369 = shalt.err (!%p2366_p7)
}
  0x8a   : > { %2144 = dma.hbm_to_vmem [thread:$0]  (!%p2651_p6), %s3104_s8, 16, %s455_s27, [#allocation11]  }
  0x8b   : > { %s2370_s14 = scalar_lea.hbm %s3109_s13, 2048 }
  0x8c   : > { %p2371_p1 = scmp.ne.s32.totalorder %s3109_s13, %s2370_s14  ;;  %p2377_p10 = scmp.lt.u32.totalorder %s2370_s14, %s3109_s13 }
  0x8e   : > { %p2373_p3 = pnand %p2371_p1, %p2665_p8 }
  0x90   : > { %p2374_p9 = pneg %p2373_p3 }
  0x92   : > { %p2379_p11 = pnand %p2377_p10, %p2374_p9 }
  0x94   : > { %2382 = shalt.err (!%p2379_p11)
}
  0x95   : > { %s2383_s27 = scalar_lea.vmem %s2739_s0, 2048  ;;  %p2391_p0 = scmp.lt.s32.totalorder %s2739_s0, %s2739_s0 }
  0x96   : > { %p2384_p12 = scmp.ne.s32.totalorder %s2739_s0, %s2383_s27  ;;  %p2392_p2 = scmp.lt.s32.totalorder %s2383_s27, %s2383_s27 }
  0x98   : > { %p2386_p4 = pnand %p2384_p12, %p2665_p8  ;;  %p2393_p5 = por %p2392_p2, %p2391_p0 }
  0x9a   : > { %p2387_p13 = pneg %p2386_p4 }
  0x9c   : > { %p2394_p7 = pnand %p2393_p5, %p2387_p13 }
  0x9e   : > { %2397 = shalt.err (!%p2394_p7)
}
  0x9f   : > { %s3116_s22 = smov 128   ;;  %s3117_s29 = smov 8  }
  0xa0   : > { %2147 = dma.hbm_to_vmem [thread:$0]  (!%p2651_p6), %s3109_s13, 2048, %s2739_s0, [#allocation14], %s3116_s22, %s3116_s22, %s3117_s29  }
  0xa1   : > { %s1642_s4 = sadd.s32 4294967294, %s2510_s21   ;;  %s2787_s26 = sadd.s32 1, %s2510_s21  }
  0xa2   : > { %s60_s30 = ssub.s32 %s2510_s21, %s2787_s26  ;;  %s63_s17 = sadd.s32 1, %s2506_s20 }
  0xa3   : > { %p61_p8 = scmp.eq.s32.totalorder %s60_s30, 0  ;;  %p70_p1 = scmp.ne.s32.totalorder %s2506_s20, %s2502_s19 }
  0xa4   : > { %p71_p3 = scmp.eq.s32.totalorder %s2510_s21, 0  ;;  %p76_p9 = scmp.ne.s32.totalorder %s2502_s19, %s2498_s18 }
  0xa5   : > { %s2798_s16 = scalar_select %p61_p8, %s2506_s20, %s63_s17  }
  0xa6   : > { %p72_p10 = por %p71_p3, %p70_p1  ;;  %p3135_p11 = scmp.eq.s32.totalorder %s2628_s24, 0 }
  0xa7   : > { %p373_p6 = scmp.eq.s32.totalorder %s2628_s24, 1  ;;  %p379_p4 = scmp.eq.s32.totalorder %s1642_s4, 1 }
  0xa8   : > { %p2802_p12 = por %p3135_p11, %p76_p9  ;;  %p2162_p13 = scmp.lt.s32.totalorder %s2510_s21, 2 }
  0xa9   : > { %s493_s0 = sand.u32 1, %s2506_s20   ;;  %p2809_p0 = por %p373_p6, %p70_p1 }
  0xaa   : > { %p2813_p2 = por %p379_p4, %p76_p9  ;;  %s2098_s11 = smul.u32 48, %s493_s0 }
  0xab   : > { %s3137_s23 = scalar_select %p2809_p0, 1, 0 }
  0xac   : > { %s3138_s10 = scalar_select %p2813_p2, 1, 0 }
  0xad   : > { %s2099_s15 = smul.u32 768, %s2510_s21  ;;  %p2818_p5 = pnand %p2162_p13, %p72_p10 }
  0xae   : > { %s497_s30 = scalar_lea.vmem [#allocation6], %s2098_s11  ;;  %s2829_s22 = scalar_lea.sflag [#allocation3], %s493_s0 }
  0xaf   : > { %s2825_s4 = scalar_lea.hbm %s3097_s1, %s2099_s15  ;;  %s504_s17 = sshll.u32 %s497_s30, 4  ;;  %s2827_s17 = int_to_ptr.vmem [resolvable:$true] %s504_s17 }
  0xb0   : > { %s2398_s29 = scalar_lea.hbm %s2825_s4, 768  ;;  %p2400_p8 = pneg %p2818_p5 }
  0xb1   : > { %p2399_p7 = scmp.ne.s32.totalorder %s2825_s4, %s2398_s29  ;;  %s2403_s12 = scalar_lea.hbm %s3097_s1, 1536 }
  0xb2   : > { %p2404_p9 = scmp.lt.u32.totalorder %s2825_s4, %s3097_s1  ;;  %p2405_p10 = scmp.lt.u32.totalorder %s2403_s12, %s2398_s29 }
  0xb3   : > { %p2401_p1 = pnand %p2400_p8, %p2399_p7  ;;  %p2407_p6 = scmp.lt.u32.totalorder %s2398_s29, %s2825_s4 }
  0xb4   : > { %p2406_p11 = por %p2405_p10, %p2404_p9 }
  0xb5   : > { %p2402_p3 = pneg %p2401_p1 }
  0xb6   : > { %p2408_p4 = por %p2407_p6, %p2406_p11 }
  0xb8   : > { %p2409_p13 = pnand %p2408_p4, %p2402_p3 }
  0xba   : > { %2412 = shalt.err (!%p2409_p13)
}
  0xbb   : > { %s2413_s0 = scalar_lea.vmem %s2827_s17, 768  ;;  %s2522_s11 = smov [#allocation6]  }
  0xbc   : > { %p2414_p7 = scmp.ne.s32.totalorder %s2827_s17, %s2413_s0  ;;  %s2418_s30 = sshll.u32 %s2522_s11, 4  ;;  %s2419_s30 = int_to_ptr.vmem [resolvable:$false] %s2418_s30 }
  0xbd   : > { %s2420_s5 = scalar_lea.vmem %s2419_s30, 1536  ;;  %p2421_p0 = scmp.lt.s32.totalorder %s2827_s17, %s2419_s30 }
  0xbe   : > { %p2416_p1 = pnand %p2414_p7, %p2400_p8  ;;  %p2422_p9 = scmp.lt.s32.totalorder %s2420_s5, %s2413_s0 }
  0xc0   : > { %p2417_p2 = pneg %p2416_p1  ;;  %p2423_p10 = por %p2422_p9, %p2421_p0 }
  0xc2   : > { %p2424_p11 = pnand %p2423_p10, %p2417_p2 }
  0xc4   : > { %2427 = shalt.err (!%p2424_p11)
}
  0xc5   : > { %s3140_s7 = smov 8   ;;  %s3141_s29 = smov 128  }
  0xc6   : > { %2151 = dma.hbm_to_vmem [thread:$0]  (!%p2818_p5), %s2825_s4, 768, %s2827_s17, %s2829_s22, %s3141_s29, %s3141_s29, %s3140_s7  }
  0xc7   : > { %p3142_p8 = scmp.ne.s32.totalorder %s3128_s25, 0 }
  0xc8   : > { %p3143_p3 = scmp.eq.s32.totalorder (!%p3142_p8), %s2628_s24, 0 }
  0xc9   : > { %516 = sbr.rel (%p3142_p8) target bundleno = 2767 (0xacf), region = 80 }
  0xd0   : > { %2473 = dma.done.wait (%p3143_p3), [#allocation5], 16   ;;  %p3144_p6 = pmov %p3143_p3 }
  0xd1   : > { %s2867_s15 = sand.u32 1, %s2502_s19  }
  0xd2   : > { %2475 = vsyncadd (%p3144_p6), [#allocation5], 4294967280  ;;  %s2100_s27 = smul.u32 48, %s2867_s15  ;;  %s523_s28 = scalar_lea.sflag [#allocation3], %s2867_s15 }
  0xd4   : > { %s526_s12 = scalar_lea.vmem [#allocation6], %s2100_s27 }
  0xd5   : > { %2477 = dma.done.wait (%p2802_p12), %s523_s28, 768  }
  0xd6   : > { %2479 = vsyncadd (%p2802_p12), %s523_s28, 4294966528  ;;  %p3145_p0 = pmov %p3143_p3 }
  0xd8   : > { %2481 = dma.done.wait (%p3145_p0), [#allocation8], 6160   ;;  %p3146_p2 = pmov %p3145_p0 }
  0xd9   : > { %p3147_p5 = pmov %p3145_p0 }
  0xda   : > { %2483 = vsyncadd (%p3146_p2), [#allocation8], 4294961136 }
  0xdb   : > { %2485 = dma.done.wait (%p3147_p5), [#allocation11], 32   ;;  %p3148_p4 = pmov %p3145_p0 }
  0xdc   : > { %p3149_p13 = pmov %p3145_p0 }
  0xdd   : > { %2487 = vsyncadd (%p3148_p4), [#allocation11], 4294967264 }
  0xde   : > { %2489 = dma.done.wait (%p3149_p13), [#allocation14], 2048   ;;  %p3150_p7 = pmov %p3145_p0 }
  0xe0   : > { %2491 = vsyncadd (%p3150_p7), [#allocation14], 4294965248 }
  0xe1   : > { %551 = sfence }
  0xe2   : > { %s600_s25 = sld [smem:[#allocation2]]  ;;  %s1660_s22 = sld [smem:[#allocation2 + $0x1]]  ;;  %v594_v0 = vld [vmem:[%s526_s12] sm:$0xff]  ;;  %v596_v1 = vld [vmem:[%s526_s12 + $0x10] sm:$0xff]  ;;  %v595_v2 = vld [vmem:[%s526_s12 + $0x8] sm:$0xff]  ;;  %vm938_vm0 = vcmask 130048  }
  0xe3   : > { %s1661_s14 = sld [smem:[#allocation2 + $0x2]]  ;;  %v598_v3 = vld [vmem:[%s526_s12 + $0x20] sm:$0xff]  ;;  %v597_v4 = vld [vmem:[%s526_s12 + $0x18] sm:$0xff]  ;;  %v599_v5 = vld [vmem:[%s526_s12 + $0x28] sm:$0xff]  ;;  %s3151_s0 = sld [smem:[#allocation27_spill]] }
  0xe4   : > { %v616_v17 = vld [vmem:[%s3098_s2] sm:$0xff]  ;;  %v617_v20 = vld [vmem:[%s3098_s2 + $0x8] sm:$0xff]  ;;  %v671_v29 = vld [vmem:[#allocation9 + $0x50] sm:$0xff]  ;;  %s3152_s29 = sld [smem:[#allocation26_spill]]  ;;  %s3153_s12 = sld [smem:[#allocation28_spill]] }
  0xe5   : > { %v662_v23 = vld [vmem:[#allocation9 + $0x8] sm:$0xff]  ;;  %v665_v24 = vld [vmem:[#allocation9 + $0x20] sm:$0xff]  ;;  %v664_v27 = vld [vmem:[#allocation9 + $0x18] sm:$0xff]  ;;  %s1659_s4 = sshll.u32 %s2867_s15, 4  ;;  %s1680_s17 = sshll.u32 %s2628_s24, 8 }
  0xe6   : > { %v661_v25 = vld [vmem:[#allocation9] sm:$0xff]  ;;  %v1926_v26 = vpack.c.bf16 %v665_v24, %v662_v23  ;;  %v668_v28 = vld [vmem:[#allocation9 + $0x38] sm:$0xff]  ;;  %v663_v32 = vld [vmem:[#allocation9 + $0x10] sm:$0xff]  ;;  %s593_s11 = scalar_lea.vmem [#allocation15], %s1659_s4  ;;  %s1496_s28 = scalar_lea.sflag [#allocation4], %s2867_s15 }
  0xe7   : > { %v1928_v30 = vpack.c.bf16 %v664_v27, %v661_v25  ;;  %v1930_v31 = vpack.c.bf16 %v671_v29, %v668_v28  ;;  %v666_v33 = vld [vmem:[#allocation9 + $0x28] sm:$0xff]  ;;  %v667_v34 = vld [vmem:[#allocation9 + $0x30] sm:$0xff]  ;;  %v677_v38 = vld [vmem:[#allocation9 + $0x80] sm:$0xff]  ;;  %v2523_v27 = vmov 0.0   ;;  %s1509_s30 = sshll.u32 %s593_s11, 4  ;;  %p3156_p1 = scmp.ne.s32.totalorder %s3137_s23, 0  ;;  %s3052_s30 = int_to_ptr.vmem [resolvable:$true] %s1509_s30 }
  0xe8   : > { %v601_v6 = vstv %s600_s25  ;;  %v605_v8 = vstv %s1660_s22  ;;  %1927 = vmatprep.subr.bf16.mxu0 %v1926_v26  ;;  %v1958_v35 = vpack.c.bf16 %v666_v33, %v663_v32  ;;  %v670_v36 = vld [vmem:[#allocation9 + $0x48] sm:$0xff]  ;;  %v669_v40 = vld [vmem:[#allocation9 + $0x40] sm:$0xff]  ;;  %v672_v41 = vld [vmem:[#allocation9 + $0x58] sm:$0xff]  ;;  %773 = vmatprep.mubr.f32.mxu0 %v2523_v27  ;;  %s2524_s24 = smov [#allocation15]  }
  0xe9   : > { %v602_v7 = vmul.f32 %v601_v6, %v594_v0  ;;  %v611_v9 = vstv %s1661_s14  ;;  %v603_v10 = vmul.f32 %v601_v6, %v595_v2  ;;  %v606_v11 = vmul.f32 %v605_v8, %v596_v1  ;;  %v674_v37 = vld [vmem:[#allocation9 + $0x68] sm:$0xff]  ;;  %1929 = vmatpush1.bf16.msra.mxu0 %v1928_v30  ;;  %v673_v44 = vld [vmem:[#allocation9 + $0x60] sm:$0xff]  ;;  %v676_v45 = vld [vmem:[#allocation9 + $0x78] sm:$0xff]  ;;  %s3154_s14 = sld [smem:[#allocation29_spill]]  ;;  %s2432_s25 = sshll.u32 %s2524_s24, 4  ;;  %s2433_s25 = int_to_ptr.vmem [resolvable:$false] %s2432_s25 }
  0xea   : > { %v612_v12 = vmul.f32 %v611_v9, %v598_v3  ;;  %v607_v13 = vmul.f32 %v605_v8, %v597_v4  ;;  %v613_v14 = vmul.f32 %v611_v9, %v599_v5  ;;  %v1932_v39 = vpack.c.bf16 %v670_v36, %v667_v34  ;;  %1931 = vmatprep.subr.bf16.mxu0 %v1930_v31  ;;  %v680_v55 = vld [vmem:[#allocation9 + $0x98] sm:$0xff]  ;;  %v683_v56 = vld [vmem:[#allocation9 + $0xb0] sm:$0xff]  ;;  %v678_v59 = vld [vmem:[#allocation9 + $0x88] sm:$0xff]  ;;  %s2434_s22 = scalar_lea.vmem %s2433_s25, 512  ;;  %p2435_p11 = scmp.lt.s32.totalorder %s3052_s30, %s2433_s25 }
  0xeb   : > { %v608_v15 = vadd.f32 %v606_v11, %v602_v7  ;;  %1959 = vmatprep.subr.bf16.mxu1 %v1958_v35  ;;  %v1934_v42 = vpack.c.bf16 %v677_v38, %v674_v37  ;;  %v1962_v43 = vpack.c.bf16 %v672_v41, %v669_v40  ;;  %v1936_v46 = vpack.c.bf16 %v676_v45, %v673_v44  ;;  %v675_v57 = vld [vmem:[#allocation9 + $0x70] sm:$0xff]  ;;  %v682_v61 = vld [vmem:[#allocation9 + $0xa8] sm:$0xff]  ;;  %v689_v1 = vld [vmem:[#allocation9 + $0xe0] sm:$0xff] }
  0xec   : > { %v609_v16 = vadd.f32 %v607_v13, %v603_v10  ;;  %1961 = vmatpush3.bf16.msra.mxu1 %v1958_v35  ;;  %v1938_v58 = vpack.c.bf16 %v683_v56, %v680_v55  ;;  %v679_v60 = vld [vmem:[#allocation9 + $0x90] sm:$0xff]  ;;  %v1966_v62 = vpack.c.bf16 %v678_v59, %v675_v57  ;;  %v686_v0 = vld [vmem:[#allocation9 + $0xc8] sm:$0xff]  ;;  %v681_v2 = vld [vmem:[#allocation9 + $0xa0] sm:$0xff] }
  0xed   : > { %v614_v18 = vadd.f32 %v612_v12, %v608_v15  ;;  %1963 = vmatprep.subr.bf16.mxu1 %v1962_v43  ;;  %1933 = vmatpush1.bf16.msra.mxu0 %v1932_v39  ;;  %v1940_v63 = vpack.c.bf16 %v682_v61, %v679_v60  ;;  %v1942_v3 = vpack.c.bf16 %v689_v1, %v686_v0  ;;  %v684_v4 = vld [vmem:[#allocation9 + $0xb8] sm:$0xff]  ;;  %v685_v5 = vld [vmem:[#allocation9 + $0xc0] sm:$0xff]  ;;  %v695_v10 = vld [vmem:[#allocation9 + $0x110] sm:$0xff] }
  0xee   : > { %v615_v19 = vadd.f32 %v613_v14, %v609_v16  ;;  %1935 = vmatprep.subr.bf16.mxu0 %v1934_v42  ;;  %v688_v6 = vld [vmem:[#allocation9 + $0xd8] sm:$0xff]  ;;  %v1970_v7 = vpack.c.bf16 %v684_v4, %v681_v2  ;;  %v687_v11 = vld [vmem:[#allocation9 + $0xd0] sm:$0xff]  ;;  %v690_v13 = vld [vmem:[#allocation9 + $0xe8] sm:$0xff] }
  0xef   : > { %v2893_v21 = vadd.f32 %v616_v17, %v614_v18  ;;  %v1944_v8 = vpack.c.bf16 %v688_v6, %v685_v5  ;;  %v692_v9 = vld [vmem:[#allocation9 + $0xf8] sm:$0xff]  ;;  %v691_v14 = vld [vmem:[#allocation9 + $0xf0] sm:$0xff]  ;;  %v694_v15 = vld [vmem:[#allocation9 + $0x108] sm:$0xff]  ;;  %v1974_v16 = vpack.c.bf16 %v690_v13, %v687_v11 }
  0xf0   : > { %v2896_v22 = vadd.f32 %v617_v20, %v615_v19  ;;  %1965 = vmatpush3.bf16.msra.mxu1 %v1962_v43  ;;  %v1946_v12 = vpack.c.bf16 %v695_v10, %v692_v9  ;;  %v1948_v17 = vpack.c.bf16 %v694_v15, %v691_v14  ;;  %v698_v18 = vld [vmem:[#allocation9 + $0x128] sm:$0xff]  ;;  %v701_v19 = vld [vmem:[#allocation9 + $0x140] sm:$0xff]  ;;  %v696_v24 = vld [vmem:[#allocation9 + $0x118] sm:$0xff] }
  0xf1   : > { %622 = vadd.xlane.f32.xlu0 %v2893_v21  ;;  %1937 = vmatpush1.bf16.msra.mxu0 %v1936_v46  ;;  %v693_v20 = vld [vmem:[#allocation9 + $0x100] sm:$0xff]  ;;  %v1950_v23 = vpack.c.bf16 %v701_v19, %v698_v18  ;;  %v700_v26 = vld [vmem:[#allocation9 + $0x138] sm:$0xff]  ;;  %v707_v31 = vld [vmem:[#allocation9 + $0x170] sm:$0xff] }
  0xf2   : > { %1939 = vmatprep.subr.bf16.mxu0 %v1938_v58  ;;  %1967 = vmatprep.subr.bf16.mxu1 %v1966_v62  ;;  %v697_v25 = vld [vmem:[#allocation9 + $0x120] sm:$0xff]  ;;  %v1978_v28 = vpack.c.bf16 %v696_v24, %v693_v20  ;;  %v704_v30 = vld [vmem:[#allocation9 + $0x158] sm:$0xff]  ;;  %v699_v32 = vld [vmem:[#allocation9 + $0x130] sm:$0xff] }
  0xf3   : > { %v1952_v29 = vpack.c.bf16 %v700_v26, %v697_v25  ;;  %v1954_v33 = vpack.c.bf16 %v707_v31, %v704_v30  ;;  %v702_v34 = vld [vmem:[#allocation9 + $0x148] sm:$0xff]  ;;  %v703_v35 = vld [vmem:[#allocation9 + $0x150] sm:$0xff]  ;;  %v705_v39 = vld [vmem:[#allocation9 + $0x160] sm:$0xff] }
  0xf4   : > { %1969 = vmatpush3.bf16.msra.mxu1 %v1966_v62  ;;  %v706_v36 = vld [vmem:[#allocation9 + $0x168] sm:$0xff]  ;;  %v1982_v37 = vpack.c.bf16 %v702_v34, %v699_v32  ;;  %v708_v40 = vld [vmem:[#allocation9 + $0x178] sm:$0xff] }
  0xf5   : > { %624 = vadd.xlane.f32.xlu0 %v2896_v22  ;;  %1941 = vmatpush1.bf16.msra.mxu0 %v1940_v63  ;;  %v1956_v38 = vpack.c.bf16 %v706_v36, %v703_v35  ;;  %v1986_v41 = vpack.c.bf16 %v708_v40, %v705_v39  ;;  %v1042_v18 = vld [vmem:[%s3102_s6] sm:$0xff]  ;;  %v1043_v19 = vld [vmem:[%s3102_s6 + $0x8] sm:$0xff]  ;;  %v1044_v26 = vld [vmem:[%s3102_s6 + $0x10] sm:$0xff] }
  0xf6   : > { %1943 = vmatprep.subr.bf16.mxu0 %v1942_v3  ;;  %1971 = vmatprep.subr.bf16.mxu1 %v1970_v7  ;;  %v1998_v20 = vpack.c.bf16 %v1043_v19, %v1042_v18  ;;  %v1046_v32 = vld [vmem:[%s3102_s6 + $0x20] sm:$0xff]  ;;  %v1048_v35 = vld [vmem:[%s3102_s6 + $0x30] sm:$0xff]  ;;  %v1049_v36 = vld [vmem:[%s3102_s6 + $0x38] sm:$0xff] }
  0xf7   : > { %v1051_v39 = vld [vmem:[%s3102_s6 + $0x48] sm:$0xff]  ;;  %v1189_v19 = vld [vmem:[%s3105_s9 + $0x70] sm:$0xff] }
  0xf8   : > { %1973 = vmatpush3.bf16.msra.mxu1 %v1970_v7 }
  0xf9   : > { %1945 = vmatpush1.bf16.msra.mxu0 %v1944_v8  ;;  %1975 = vmatprep.subr.bf16.mxu1 %v1974_v16 }
  0xfa   : > { %1947 = vmatprep.subr.bf16.mxu0 %v1946_v12 }
  0xfc   : > { %1977 = vmatpush3.bf16.msra.mxu1 %v1974_v16 }
  0xfd   : > { %1949 = vmatpush1.bf16.msra.mxu0 %v1948_v17  ;;  %1979 = vmatprep.subr.bf16.mxu1 %v1978_v28 }
  0xfe   : > { %1951 = vmatprep.subr.bf16.mxu0 %v1950_v23 }
 0x100   : > { %1981 = vmatpush3.bf16.msra.mxu1 %v1978_v28 }
 0x101   : > { %1953 = vmatpush1.bf16.msra.mxu0 %v1952_v29  ;;  %1983 = vmatprep.subr.bf16.mxu1 %v1982_v37 }
 0x102   : > { %1955 = vmatprep.subr.bf16.mxu0 %v1954_v33  ;;  %v1047_v33 = vld [vmem:[%s3102_s6 + $0x28] sm:$0xff] }
 0x103   : > { %v2006_v34 = vpack.c.bf16 %v1047_v33, %v1046_v32 }
 0x104   : > { %1985 = vmatpush3.bf16.msra.mxu1 %v1982_v37  ;;  %v2010_v37 = vpack.c.bf16 %v1049_v36, %v1048_v35  ;;  %v1667_v35 = vld [vmem:[#allocation12] ss:$0 sm:$0xff] }
 0x105   : > { %1957 = vmatpush1.bf16.msra.mxu0 %v1956_v38  ;;  %1987 = vmatprep.subr.bf16.mxu1 %v1986_v41  ;;  %v1050_v38 = vld [vmem:[%s3102_s6 + $0x40] sm:$0xff] }
 0x106   : > { %v2014_v40 = vpack.c.bf16 %v1051_v39, %v1050_v38 }
 0x108   : > { %1989 = vmatpush3.bf16.msra.mxu1 %v1986_v41  ;;  %v1052_v41 = vld [vmem:[%s3102_s6 + $0x50] sm:$0xff] }
 0x17e   : > { %v623_v47 = vpop.xlane.xlu0 %622 }
 0x17f   : > { %v627_v48 = vmul.f32 0.0078125, %v623_v47 }
 0x181   : > { %v2900_v49 = vsub.f32 %v2893_v21, %v627_v48 }
 0x182   : > { %v625_v50 = vpop.xlane.xlu0 %624 }
 0x183   : > { %v628_v51 = vmul.f32 0.0078125, %v625_v50  ;;  %v631_v52 = vmul.f32 %v2900_v49, %v2900_v49  ;;  %v1662_v50 = vld [vmem:[%s3099_s3] ss:$0 sm:$0xff] }
 0x185   : > { %v2905_v53 = vsub.f32 %v2896_v22, %v628_v51  ;;  %633 = vadd.xlane.f32.xlu1 %v631_v52  ;;  %v1663_v52 = vld [vmem:[#allocation7] ss:$0 sm:$0xff] }
 0x187   : > { %v632_v54 = vmul.f32 %v2905_v53, %v2905_v53 }
 0x189   : > { %635 = vadd.xlane.f32.xlu1 %v632_v54 }
 0x212   : > { %v634_v42 = vpop.xlane.xlu1 %633 }
 0x213   : > { %v637_v43 = vmul.f32 0.0078125, %v634_v42  ;;  %v1053_v42 = vld [vmem:[%s3102_s6 + $0x58] sm:$0xff] }
 0x215   : > { %v639_v44 = vadd.f32 1e-05, %v637_v43  ;;  %v2018_v43 = vpack.c.bf16 %v1053_v42, %v1052_v41  ;;  %v1292_v41 = vld [vmem:[%s3151_s0 + $0x8] sm:$0xff] }
 0x216   : > { %v636_v45 = vpop.xlane.xlu1 %635 }
 0x217   : > { %2215 = vrsqrt.f32 %v639_v44  ;;  %v638_v46 = vmul.f32 0.0078125, %v636_v45  ;;  %v1054_v44 = vld [vmem:[%s3102_s6 + $0x60] sm:$0xff]  ;;  %v1055_v45 = vld [vmem:[%s3102_s6 + $0x68] sm:$0xff] }
 0x219   : > { %v640_v47 = vadd.f32 1e-05, %v638_v46  ;;  %v2022_v46 = vpack.c.bf16 %v1055_v45, %v1054_v44  ;;  %v1384_v44 = vld [vmem:[#allocation13 + $0x8] sm:$0xff]  ;;  %v1385_v45 = vld [vmem:[#allocation13 + $0x10] sm:$0xff] }
 0x21b   : > { %2217 = vrsqrt.f32 %v640_v47  ;;  %v1056_v47 = vld [vmem:[%s3102_s6 + $0x70] sm:$0xff] }
 0x221   : > { %v2216_v48 = vpop.eup %2215 }
 0x222   : > { %v643_v51 = vmul.f32 %v2216_v48, %v2900_v49  ;;  %v1057_v48 = vld [vmem:[%s3102_s6 + $0x78] sm:$0xff] }
 0x224   : > { %v651_v54 = vmul.f32 %v1662_v50, %v643_v51 }
 0x225   : > { %v2218_v55 = vpop.eup %2217 }
 0x226   : > { %v659_v56 = vadd.f32 %v1663_v52, %v651_v54  ;;  %v644_v57 = vmul.f32 %v2218_v55, %v2905_v53 }
 0x228   : > { %774 = vmatmul.mubr.f32.vlgmr.msra.gmra.mrb[0].mxu0 %v659_v56  ;;  %1797 = vmatprep.mubr.f32.mxu1 %v659_v56  ;;  %v652_v58 = vmul.f32 %v1662_v50, %v644_v57  ;;  %v2026_v50 = vpack.c.bf16 %v1057_v48, %v1056_v47  ;;  %v1386_v47 = vld [vmem:[#allocation13 + $0x18] sm:$0xff] }
 0x229   : > { %779 = vmatprep.mubr.f32.mxu0 %v2523_v27  ;;  %v1045_v27 = vld [vmem:[%s3102_s6 + $0x18] sm:$0xff]  ;;  %v2070_v48 = vpack.c.bf16 %v1386_v47, %v1385_v45 }
 0x22a   : > { %v660_v59 = vadd.f32 %v1663_v52, %v652_v58  ;;  %v2002_v31 = vpack.c.bf16 %v1045_v27, %v1044_v26  ;;  %v1175_v58 = vld [vmem:[%s3105_s9] sm:$0xff] }
 0x22c   : > { %780 = vmatmul.mubr.f32.gmra.mrb[2].mxu0 %v660_v59  ;;  %1798 = vmatmul.mubr.f32.vlgmr.msra.gmra.mrb[0].mxu1 %v660_v59  ;;  %v1176_v59 = vld [vmem:[%s3105_s9 + $0x8] sm:$0xff] }
 0x2fb   : > { %v775_v60 = vpop.f32.mrb[0].mxu0 }
 0x2fc   : > { %v777_v61 = vpop.f32.mrb[1].mxu0  ;;  %1804 = vmatprep.mubr.f32.mxu1 %v775_v60  ;;  %v2030_v60 = vpack.c.bf16 %v1176_v59, %v1175_v58  ;;  %v1391_v59 = vld [vmem:[#allocation13 + $0x40] sm:$0xff] }
 0x2fe   : > { %2031 = vmatprep.subr.bf16.mxu0 %v2030_v60 }
 0x2ff   : > { %v781_v62 = vpop.f32.mrb[2].mxu0  ;;  %v1799_v63 = vpop.f32.mrb[0].mxu1  ;;  %2033 = vmatpush3.bf16.msra.mxu0 %v2030_v60 }
 0x300   : > { %v783_v0 = vpop.f32.mrb[3].mxu0  ;;  %v852_v49 = vpop.f32.mrb[1].mxu1 }
 0x301   : > { %v1990_v1 = vpack.c.bf16 %v783_v0, %v777_v61  ;;  %v1994_v2 = vpack.c.bf16 %v1799_v63, %v852_v49  ;;  %v1180_v63 = vld [vmem:[%s3105_s9 + $0x28] sm:$0xff] }
 0x303   : > { %1991 = vmatprep.subr.bf16.mxu1 %v1990_v1 }
 0x304   : > { %1993 = vmatpush3.bf16.xpose.msra.mxu1 %v1990_v1 }
 0x305   : > { %1995 = vmatprep.subr.bf16.mxu1 %v1994_v2 }
 0x30b   : > { %1805 = vmatmul.mubr.f32.vlgmr.msra.gmra.mrb[2].mxu1 %v781_v62  ;;  %v1179_v62 = vld [vmem:[%s3105_s9 + $0x20] sm:$0xff] }
 0x30c   : > { %1997 = vmatpush3.bf16.msra.mxu1 %v1994_v2  ;;  %v2038_v0 = vpack.c.bf16 %v1180_v63, %v1179_v62  ;;  %v1395_v63 = vld [vmem:[#allocation13 + $0x60] sm:$0xff] }
 0x30d   : > { %1999 = vmatprep.subr.bf16.mxu1 %v1998_v20 }
 0x3de   : > { %v1806_v53 = vpop.f32.mrb[2].mxu1 }
 0x3df   : > { %v937_v3 = vmul.f32 0.088388346, %v1806_v53  ;;  %v927_v4 = vpop.f32.mrb[3].mxu1 }
 0x3e0   : > { %v936_v5 = vmul.f32 0.088388346, %v927_v4 }
 0x3e1   : > { %v942_v6 = vsel %vm938_vm0, %v937_v3, -inf }
 0x3e2   : > { %943 = vmax.xlane.f32.xlu1 %v942_v6  ;;  %v939_v7 = vsel %vm938_vm0, %v936_v5, -inf }
 0x3e3   : > { %940 = vmax.xlane.f32.xlu0 %v939_v7  ;;  %v1181_v7 = vld [vmem:[%s3105_s9 + $0x30] sm:$0xff] }
 0x46f   : > { %v944_v8 = vpop.xlane.xlu1 %943 }
 0x470   : > { %v946_v9 = vsub.f32 %v937_v3, %v944_v8  ;;  %v941_v10 = vpop.xlane.xlu0 %940  ;;  %v1182_v8 = vld [vmem:[%s3105_s9 + $0x38] sm:$0xff] }
 0x471   : > { %v945_v11 = vsub.f32 %v936_v5, %v941_v10  ;;  %v1183_v10 = vld [vmem:[%s3105_s9 + $0x40] sm:$0xff] }
 0x472   : > { %v949_v12 = vmul.f32 1.442695, %v946_v9  ;;  %v2042_v9 = vpack.c.bf16 %v1182_v8, %v1181_v7 }
 0x473   : > { %v947_v13 = vmul.f32 1.442695, %v945_v11  ;;  %v1184_v11 = vld [vmem:[%s3105_s9 + $0x48] sm:$0xff] }
 0x474   : > { %2219 = vpow2.f32 %v949_v12  ;;  %v2046_v12 = vpack.c.bf16 %v1184_v11, %v1183_v10 }
 0x475   : > { %2221 = vpow2.f32 %v947_v13  ;;  %v1185_v13 = vld [vmem:[%s3105_s9 + $0x50] sm:$0xff] }
 0x47e   : > { %v2220_v14 = vpop.eup %2219 }
 0x47f   : > { %v2222_v15 = vpop.eup %2221  ;;  %v954_v16 = vsel %vm938_vm0, %v2220_v14, 0.0 }
 0x480   : > { %955 = vadd.xlane.f32.xlu1 %v954_v16  ;;  %v951_v17 = vsel %vm938_vm0, %v2222_v15, 0.0  ;;  %v1187_v16 = vld [vmem:[%s3105_s9 + $0x60] sm:$0xff] }
 0x481   : > { %952 = vadd.xlane.f32.xlu0 %v951_v17  ;;  %v1188_v17 = vld [vmem:[%s3105_s9 + $0x68] sm:$0xff] }
 0x482   : > { %v2054_v18 = vpack.c.bf16 %v1188_v17, %v1187_v16 }
 0x50d   : > { %v956_v23 = vpop.xlane.xlu1 %955 }
 0x50e   : > { %2223 = vrcp.f32 %v956_v23  ;;  %v953_v24 = vpop.xlane.xlu0 %952 }
 0x50f   : > { %2225 = vrcp.f32 %v953_v24 }
 0x518   : > { %v2224_v25 = vpop.eup %2223 }
 0x519   : > { %v2226_v28 = vpop.eup %2225  ;;  %v960_v30 = vmul.f32 %v2224_v25, %v2220_v14  ;;  %v1186_v14 = vld [vmem:[%s3105_s9 + $0x58] sm:$0xff] }
 0x51a   : > { %v959_v29 = vmul.f32 %v2226_v28, %v2222_v15  ;;  %v2050_v15 = vpack.c.bf16 %v1186_v14, %v1185_v13 }
 0x51c   : > { %1811 = vmatprep.mubr.msk.f32.mxu1 %vm938_vm0, %v959_v29 }
 0x51d   : > { %1812 = vmatmul.mubr.msk.f32.vlgmr.msra.gmra.mrb[4].mxu1 %vm938_vm0, %v960_v30 }
 0x51e   : > { %2001 = vmatpush3.bf16.msra.mxu1 %v1998_v20  ;;  %v1190_v20 = vld [vmem:[%s3105_s9 + $0x78] sm:$0xff] }
 0x51f   : > { %2003 = vmatprep.subr.bf16.mxu1 %v2002_v31  ;;  %v2058_v23 = vpack.c.bf16 %v1190_v20, %v1189_v19 }
 0x522   : > { %2005 = vmatpush3.bf16.msra.mxu1 %v2002_v31  ;;  %v1666_v31 = vld [vmem:[#allocation10] ss:$0 sm:$0xff] }
 0x523   : > { %2007 = vmatprep.subr.bf16.mxu1 %v2006_v34 }
 0x526   : > { %2009 = vmatpush3.bf16.msra.mxu1 %v2006_v34 }
 0x527   : > { %2011 = vmatprep.subr.bf16.mxu1 %v2010_v37 }
 0x52a   : > { %2013 = vmatpush3.bf16.msra.mxu1 %v2010_v37 }
 0x52b   : > { %2015 = vmatprep.subr.bf16.mxu1 %v2014_v40 }
 0x52e   : > { %2017 = vmatpush3.bf16.msra.mxu1 %v2014_v40  ;;  %v1291_v40 = vld [vmem:[%s3151_s0] sm:$0xff] }
 0x52f   : > { %2019 = vmatprep.subr.bf16.mxu1 %v2018_v43  ;;  %v2062_v42 = vpack.c.bf16 %v1292_v41, %v1291_v40 }
 0x532   : > { %2021 = vmatpush3.bf16.msra.mxu1 %v2018_v43  ;;  %v1383_v43 = vld [vmem:[#allocation13] sm:$0xff] }
 0x533   : > { %2023 = vmatprep.subr.bf16.mxu1 %v2022_v46 }
 0x536   : > { %2025 = vmatpush3.bf16.msra.mxu1 %v2022_v46  ;;  %v2066_v46 = vpack.c.bf16 %v1384_v44, %v1383_v43 }
 0x537   : > { %2027 = vmatprep.subr.bf16.mxu1 %v2026_v50 }
 0x53a   : > { %2029 = vmatpush3.bf16.msra.mxu1 %v2026_v50  ;;  %v1387_v50 = vld [vmem:[#allocation13 + $0x20] sm:$0xff] }
 0x53b   : > { %2063 = vmatprep.subr.bf16.mxu1 %v2062_v42 }
 0x5f0   : > { %v1813_v51 = vpop.f32.mrb[4].mxu1 }
 0x5f1   : > { %v1033_v52 = vpop.f32.mrb[5].mxu1 }
 0x5f2   : > { %1846 = vmatprep.mubr.f32.mxu1 %v1033_v52 }
 0x5f3   : > { %1847 = vmatmul.mubr.f32.vlgmr.msra.gmra.mrb[6].mxu1 %v1813_v51  ;;  %v1388_v51 = vld [vmem:[#allocation13 + $0x28] sm:$0xff] }
 0x5f4   : > { %2065 = vmatpush3.bf16.msra.mxu1 %v2062_v42  ;;  %v2074_v52 = vpack.c.bf16 %v1388_v51, %v1387_v50 }
 0x6c6   : > { %v1848_v54 = vpop.f32.mrb[6].mxu1 }
 0x6c7   : > { %v2969_v55 = vadd.f32 %v1848_v54, %v2896_v22  ;;  %v1124_v56 = vpop.f32.mrb[7].mxu1  ;;  %v1177_v22 = vld [vmem:[%s3105_s9 + $0x10] sm:$0xff] }
 0x6c8   : > { %v2972_v57 = vadd.f32 %v1124_v56, %v2893_v21  ;;  %v1178_v21 = vld [vmem:[%s3105_s9 + $0x18] sm:$0xff] }
 0x6c9   : > { %1139 = vadd.xlane.f32.xlu1 %v2969_v55  ;;  %v2034_v61 = vpack.c.bf16 %v1178_v21, %v1177_v22  ;;  %v1389_v54 = vld [vmem:[#allocation13 + $0x30] sm:$0xff]  ;;  %v1390_v56 = vld [vmem:[#allocation13 + $0x38] sm:$0xff]  ;;  %v1392_v22 = vld [vmem:[#allocation13 + $0x48] sm:$0xff] }
 0x6ca   : > { %1137 = vadd.xlane.f32.xlu0 %v2972_v57  ;;  %v2078_v58 = vpack.c.bf16 %v1390_v56, %v1389_v54  ;;  %v2082_v60 = vpack.c.bf16 %v1392_v22, %v1391_v59  ;;  %v1393_v21 = vld [vmem:[#allocation13 + $0x50] sm:$0xff] }
 0x6cb   : > { %2035 = vmatprep.subr.bf16.mxu0 %v2034_v61 }
 0x6cc   : > { %2037 = vmatpush3.bf16.msra.mxu0 %v2034_v61  ;;  %v1394_v61 = vld [vmem:[#allocation13 + $0x58] sm:$0xff] }
 0x6cd   : > { %2039 = vmatprep.subr.bf16.mxu0 %v2038_v0  ;;  %v2086_v62 = vpack.c.bf16 %v1394_v61, %v1393_v21 }
 0x6d0   : > { %2041 = vmatpush3.bf16.msra.mxu0 %v2038_v0  ;;  %v1396_v0 = vld [vmem:[#allocation13 + $0x68] sm:$0xff] }
 0x6d1   : > { %2043 = vmatprep.subr.bf16.mxu0 %v2042_v9 }
 0x6d4   : > { %2045 = vmatpush3.bf16.msra.mxu0 %v2042_v9 }
 0x6d5   : > { %2047 = vmatprep.subr.bf16.mxu0 %v2046_v12 }
 0x6d8   : > { %2049 = vmatpush3.bf16.msra.mxu0 %v2046_v12 }
 0x6d9   : > { %2051 = vmatprep.subr.bf16.mxu0 %v2050_v15 }
 0x6dc   : > { %2053 = vmatpush3.bf16.msra.mxu0 %v2050_v15 }
 0x6dd   : > { %2055 = vmatprep.subr.bf16.mxu0 %v2054_v18 }
 0x6e0   : > { %2057 = vmatpush3.bf16.msra.mxu0 %v2054_v18 }
 0x6e1   : > { %2059 = vmatprep.subr.bf16.mxu0 %v2058_v23 }
 0x6e4   : > { %2061 = vmatpush3.bf16.msra.mxu0 %v2058_v23 }
 0x6e5   : > { %2067 = vmatprep.subr.bf16.mxu0 %v2066_v46 }
 0x756   : > { %v1140_v49 = vpop.xlane.xlu1 %1139 }
 0x757   : > { %v1142_v1 = vmul.f32 0.0078125, %v1140_v49  ;;  %v1138_v2 = vpop.xlane.xlu0 %1137  ;;  %v2090_v49 = vpack.c.bf16 %v1396_v0, %v1395_v63 }
 0x758   : > { %v1141_v53 = vmul.f32 0.0078125, %v1138_v2 }
 0x759   : > { %v1144_v3 = vsub.f32 %v2969_v55, %v1142_v1  ;;  %v1668_v1 = vld [vmem:[%s3152_s29] ss:$0 sm:$0xff]  ;;  %s3155_s29 = sld [smem:[#allocation30_spill]] }
 0x75a   : > { %v1143_v4 = vsub.f32 %v2972_v57, %v1141_v53 }
 0x75b   : > { %v1146_v5 = vmul.f32 %v1144_v3, %v1144_v3 }
 0x75c   : > { %v1145_v6 = vmul.f32 %v1143_v4, %v1143_v4 }
 0x75d   : > { %1149 = vadd.xlane.f32.xlu1 %v1146_v5 }
 0x75e   : > { %1147 = vadd.xlane.f32.xlu0 %v1145_v6 }
 0x75f   : > { %s3050_s27 = scalar_lea.hbm %s3155_s29, %s1680_s17 }
 0x7ea   : > { %v1150_v24 = vpop.xlane.xlu1 %1149 }
 0x7eb   : > { %v1152_v25 = vmul.f32 0.0078125, %v1150_v24  ;;  %v1148_v26 = vpop.xlane.xlu0 %1147 }
 0x7ec   : > { %v1151_v27 = vmul.f32 0.0078125, %v1148_v26  ;;  %v1398_v26 = vld [vmem:[#allocation13 + $0x78] sm:$0xff] }
 0x7ed   : > { %v1154_v28 = vadd.f32 1e-05, %v1152_v25  ;;  %v1397_v25 = vld [vmem:[#allocation13 + $0x70] sm:$0xff] }
 0x7ee   : > { %v1153_v29 = vadd.f32 1e-05, %v1151_v27  ;;  %v2094_v27 = vpack.c.bf16 %v1398_v26, %v1397_v25 }
 0x7ef   : > { %2227 = vrsqrt.f32 %v1154_v28  ;;  %v1669_v28 = vld [vmem:[%s3153_s12] ss:$0 sm:$0xff]  ;;  %s2428_s12 = scalar_lea.vmem %s3052_s30, 256 }
 0x7f0   : > { %2229 = vrsqrt.f32 %v1153_v29  ;;  %p2429_p12 = scmp.ne.s32.totalorder %s3052_s30, %s2428_s12  ;;  %p2436_p8 = scmp.lt.s32.totalorder %s2434_s22, %s2428_s12 }
 0x7f2   : > { %p2430_p9 = pnand %p2429_p12, %p3156_p1  ;;  %p2437_p3 = por %p2436_p8, %p2435_p11 }
 0x7f4   : > { %p2431_p10 = pneg %p2430_p9 }
 0x7f6   : > { %p2438_p6 = pnand %p2437_p3, %p2431_p10 }
 0x7f9   : > { %v2228_v30 = vpop.eup %2227 }
 0x7fa   : > { %v2230_v32 = vpop.eup %2229  ;;  %v1158_v33 = vmul.f32 %v2228_v30, %v1144_v3 }
 0x7fb   : > { %v1157_v34 = vmul.f32 %v2230_v32, %v1143_v4 }
 0x7fc   : > { %v1166_v36 = vmul.f32 %v1666_v31, %v1158_v33 }
 0x7fd   : > { %v1165_v37 = vmul.f32 %v1666_v31, %v1157_v34 }
 0x7fe   : > { %v1174_v39 = vadd.f32 %v1667_v35, %v1166_v36 }
 0x7ff   : > { %v1173_v38 = vadd.f32 %v1667_v35, %v1165_v37  ;;  %v1672_v35 = vld [vmem:[%s3154_s14] ss:$0 sm:$0xff] }
 0x801   : > { %1881 = vmatprep.mubr.f32.mxu0 %v1173_v38 }
 0x802   : > { %1882 = vmatmul.mubr.f32.vlgmr.msra.gmra.mrb[4].mxu0 %v1174_v39 }
 0x803   : > { %2069 = vmatpush3.bf16.msra.mxu0 %v2066_v46 }
 0x804   : > { %2071 = vmatprep.subr.bf16.mxu0 %v2070_v48 }
 0x807   : > { %2073 = vmatpush3.bf16.msra.mxu0 %v2070_v48 }
 0x808   : > { %2075 = vmatprep.subr.bf16.mxu0 %v2074_v52 }
 0x80b   : > { %2077 = vmatpush3.bf16.msra.mxu0 %v2074_v52 }
 0x80c   : > { %2079 = vmatprep.subr.bf16.mxu0 %v2078_v58 }
 0x80f   : > { %2081 = vmatpush3.bf16.msra.mxu0 %v2078_v58 }
 0x810   : > { %2083 = vmatprep.subr.bf16.mxu0 %v2082_v60 }
 0x813   : > { %2085 = vmatpush3.bf16.msra.mxu0 %v2082_v60 }
 0x814   : > { %2087 = vmatprep.subr.bf16.mxu0 %v2086_v62 }
 0x817   : > { %2089 = vmatpush3.bf16.msra.mxu0 %v2086_v62 }
 0x818   : > { %2091 = vmatprep.subr.bf16.mxu0 %v2090_v49 }
 0x81b   : > { %2093 = vmatpush3.bf16.msra.mxu0 %v2090_v49 }
 0x81c   : > { %2095 = vmatprep.subr.bf16.mxu0 %v2094_v27 }
 0x81f   : > { %2097 = vmatpush3.bf16.msra.mxu0 %v2094_v27 }
 0x8d5   : > { %v1883_v2 = vpop.f32.mrb[4].mxu0 }
 0x8d6   : > { %v1270_v53 = vadd.f32 %v1883_v2, %v1668_v1  ;;  %v1264_v3 = vpop.f32.mrb[5].mxu0 }
 0x8d7   : > { %v1265_v4 = vadd.f32 %v1668_v1, %v1264_v3 }
 0x8d8   : > { %v1274_v5 = vmul.f32 %v1270_v53, %v1270_v53 }
 0x8d9   : > { %v1273_v6 = vmul.f32 %v1265_v4, %v1265_v4 }
 0x8da   : > { %v1276_v7 = vmul.f32 %v1274_v5, %v1270_v53 }
 0x8db   : > { %v1275_v8 = vmul.f32 %v1273_v6, %v1265_v4 }
 0x8dc   : > { %v1278_v9 = vmul.f32 0.044715, %v1276_v7 }
 0x8dd   : > { %v1277_v10 = vmul.f32 0.044715, %v1275_v8 }
 0x8de   : > { %v1280_v11 = vadd.f32 %v1278_v9, %v1270_v53 }
 0x8df   : > { %v1279_v12 = vadd.f32 %v1277_v10, %v1265_v4 }
 0x8e0   : > { %v1282_v13 = vmul.f32 0.7978846, %v1280_v11 }
 0x8e1   : > { %v1281_v14 = vmul.f32 0.7978846, %v1279_v12 }
 0x8e2   : > { %2231 = vtanh.f32 %v1282_v13 }
 0x8e3   : > { %2233 = vtanh.f32 %v1281_v14 }
 0x8ec   : > { %v2232_v15 = vpop.eup %2231 }
 0x8ed   : > { %v2234_v16 = vpop.eup %2233  ;;  %v1286_v17 = vadd.f32 1.0, %v2232_v15 }
 0x8ee   : > { %v1285_v18 = vadd.f32 1.0, %v2234_v16 }
 0x8ef   : > { %v1288_v19 = vmul.f32 0.5, %v1286_v17 }
 0x8f0   : > { %v1287_v20 = vmul.f32 0.5, %v1285_v18 }
 0x8f1   : > { %v1290_v24 = vmul.f32 %v1288_v19, %v1270_v53 }
 0x8f2   : > { %v1289_v23 = vmul.f32 %v1287_v20, %v1265_v4 }
 0x8f4   : > { %1888 = vmatprep.mubr.msk.f32.mxu1 %vm938_vm0, %v1289_v23 }
 0x8f5   : > { %1889 = vmatmul.mubr.msk.f32.vlgmr.msra.gmra.mrb[8].mxu1 %vm938_vm0, %v1290_v24 }
 0x9c8   : > { %v1890_v29 = vpop.f32.mrb[8].mxu1 }
 0x9c9   : > { %v1378_v30 = vadd.f32 %v1890_v29, %v1669_v28  ;;  %v1372_v31 = vpop.f32.mrb[9].mxu1 }
 0x9ca   : > { %v1373_v32 = vadd.f32 %v1669_v28, %v1372_v31 }
 0x9cb   : > { %v1382_v34 = vadd.f32 %v1378_v30, %v2969_v55 }
 0x9cc   : > { %v1381_v33 = vadd.f32 %v1373_v32, %v2972_v57 }
 0x9ce   : > { %1923 = vmatprep.mubr.f32.mxu0 %v1381_v33 }
 0x9cf   : > { %1924 = vmatmul.mubr.f32.vlgmr.msra.gmra.mrb[6].mxu0 %v1382_v34 }
 0xaa2   : > { %v1925_v36 = vpop.f32.mrb[6].mxu0 }
 0xaa3   : > { %v1478_v37 = vadd.f32 %v1925_v36, %v1672_v35  ;;  %v1472_v38 = vpop.f32.mrb[7].mxu0 }
 0xaa4   : > { %v1473_v39 = vadd.f32 %v1672_v35, %v1472_v38 }
 0xaa5   : > { %v1674_v40 = vmul.f32 -1.442695, %v1478_v37 }
 0xaa6   : > { %v1673_v41 = vmul.f32 -1.442695, %v1473_v39 }
 0xaa7   : > { %2235 = vpow2.f32 %v1674_v40 }
 0xaa8   : > { %2237 = vpow2.f32 %v1673_v41 }
 0xab1   : > { %v2236_v42 = vpop.eup %2235 }
 0xab2   : > { %v2238_v57 = vpop.eup %2237  ;;  %v1488_v55 = vadd.f32 1.0, %v2236_v42 }
 0xab3   : > { %v1487_v43 = vadd.f32 1.0, %v2238_v57 }
 0xab4   : > { %2239 = vrcp.f32 %v1488_v55 }
 0xab5   : > { %2241 = vrcp.f32 %v1487_v43 }
 0xabe   : > { %v2240_v44 = vpop.eup %2239 }
 0xabf   : > { %v2242_v45 = vpop.eup %2241  ;;  %1494 = vst [vmem:[%s593_s11 + $0x8] sm:$0xff] %v2240_v44 }
 0xac0   : > { %1493 = vst [vmem:[%s593_s11] sm:$0xff] %v2242_v45 }
 0xac1   : > { %2441 = shalt.err (!%p2438_p6)
}
 0xac2   : > { %s2442_s14 = scalar_lea.hbm %s3050_s27, 256  ;;  %s2446_s11 = scalar_lea.hbm %s3155_s29, 512 }
 0xac3   : > { %p2443_p0 = scmp.ne.s32.totalorder %s3050_s27, %s2442_s14  ;;  %p2447_p4 = scmp.lt.u32.totalorder %s3050_s27, %s3155_s29 }
 0xac4   : > { %p2448_p13 = scmp.lt.u32.totalorder %s2446_s11, %s2442_s14  ;;  %p2450_p12 = scmp.lt.u32.totalorder %s2442_s14, %s3050_s27 }
 0xac5   : > { %p2444_p2 = pnand %p2443_p0, %p3156_p1 }
 0xac6   : > { %p2449_p7 = por %p2448_p13, %p2447_p4 }
 0xac7   : > { %p2445_p5 = pneg %p2444_p2 }
 0xac8   : > { %p2451_p9 = por %p2450_p12, %p2449_p7 }
 0xaca   : > { %p2452_p10 = pnand %p2451_p9, %p2445_p5 }
 0xacc   : > { %2455 = shalt.err (!%p2452_p10)
}
 0xacd   : > { %s2525_s12 = smov 128   ;;  %s2526_s24 = smov 8  }
 0xace   : > { %2127 = dma.vmem_to_hbm [thread:$0]  (%p3156_p1), %s3052_s30, 256, %s3050_s27, %s1496_s28, %s2525_s12, %s2525_s12, %s2526_s24  }
 0xacf PF: > { %s1524_s25 = sand.u32 1, %s2498_s18   ;;  %p3157_p11 = scmp.ne.s32.totalorder %s3138_s10, 0 }
 0xad0   : > { %p3158_p8 = scmp.ge.s32.totalorder %s2510_s21, 2  ;;  %s1525_s22 = scalar_lea.sflag [#allocation4], %s1524_s25 }
 0xad2   : > { %p2153_p3 = pnand %p3158_p8, %p3157_p11 }
 0xad4   : > { %2493 = dma.done.wait (!%p2153_p3), %s1525_s22, 256  }
 0xad5   : > { %2495 = vsyncadd (!%p2153_p3), %s1525_s22, 4294967040  ;;  %p32_p6 = scmp.ge.s32.totalorder %s2787_s26, 4   ;;  %s3159_s18 = smov %s2502_s19 }
 0xad6   : > { %s3160_s19 = smov %s2506_s20  ;;  %s3161_s20 = smov %s2798_s16 }
 0xad7   : > { %s3162_s21 = smov %s2787_s26  ;;  %34 = sbr.rel (!%p32_p6) target bundleno = 19 (0x13), region = 150 }
 0xade   :  { %1530 = vsyncpa [#allocation3], 1 }
 0xadf   :  { %1532 = vsyncpa [#allocation3 + $0x1], 1 }
 0xae0   :  { %1533 = vsyncpa [#allocation8], 1 }
 0xae1   :  { %1534 = vsyncpa [#allocation11], 1 }
 0xae2   :  { %1535 = vsyncpa [#allocation14], 1 }
 0xae3   :  { %1536 = vsyncpa [#allocation4], 1 }
 0xae4   :  { %1538 = vsyncpa [#allocation4 + $0x1], 1 }
 0xae5   :  { %1539 = vsyncpa [#allocation5], 1 }
 0xae6   :  { %1541 = vsyncpa [#allocation5 + $0x1], 1 }

</bundles_post_ra>
